<compile_context>
chip_gen: v5e
topology: v5e:2x2
jax: 0.10.0
libtpu: 0.0.40
codegen_flags: <defaults>
</compile_context>

<pallas_src>
import numpy as np
import jax
import jax.numpy as jnp
from jax.experimental import pallas as pl
from jax.experimental.pallas import tpu as pltpu


# ----------------------------------------------------------------------------
# Parameter construction (deterministic, mirrors DoGFB.initialize, across_channels=True)
# ----------------------------------------------------------------------------
def gaussian_kernel(sigma, size, norm=False):
    half = (size - 1) / 2.0
    coords = np.arange(size, dtype=np.float64) - half
    yy, xx = np.meshgrid(coords, coords, indexing="ij")
    k = np.exp(-(xx ** 2 + yy ** 2) / (2.0 * float(sigma) ** 2))
    if norm:
        k = k / k.sum()
    return k.astype(np.float32)


def build_dog_weights(in_channels, out_channels, kernel_size, r_c, r_s, opponency):
    """across_channels=True branch of DoGFB.initialize -> (O, C, K, K) weights."""
    w = np.zeros((out_channels, in_channels, kernel_size, kernel_size), np.float32)
    for i in range(out_channels):
        center = gaussian_kernel(sigma=r_c[i] / np.sqrt(2), size=kernel_size, norm=False)
        surround = gaussian_kernel(sigma=r_s[i] / np.sqrt(2), size=kernel_size, norm=False)
        kernels = [c * center + s * surround for c, s in zip(*opponency[i])]
        w[i] = np.stack(kernels, axis=0)
        s = np.abs(w[i].sum())
        assert s > 1e-6, "DoG weight normalization by ~0 (degenerate opponency)"
        w[i] /= s
    return w


def _round_up(x, m):
    return (x + m - 1) // m * m


# ----------------------------------------------------------------------------
# Pallas conv: reflect-padded 'same' conv, all arithmetic inside the kernel
# ----------------------------------------------------------------------------
def make_dog_conv(N, C, O, H, W, K):
    pad = K // 2
    Hp, Wp = H + 2 * pad, W + 2 * pad
    assert H > pad and W > pad, "reflect padding needs H, W > K // 2"

    Cp = _round_up(C, 8)            # sublane-granule pad only (review: not 128)
    Op = _round_up(O, 8)
    n_valid = N * Hp * Wp           # flat padded grid (lane index = n*Hp*Wp + h*Wp + w)
    L = _round_up(n_valid, 128)     # lane-dense output width -> unmasked stores
    smax = (K - 1) * Wp + (K - 1)   # largest lane shift used by any tap
    Lx = _round_up(L + smax, 128)   # input lane count (zero tail feeds garbage lanes only)

    def kernel(w_ref, x_ref, o_ref):
        # w_ref: (K, K, Op, Cp)  DoG taps, (O, C) zero-padded to the sublane granule
        # x_ref: (Cp, Lx)        reflect-padded input, lanes = flat (n, h', w')
        # o_ref: (Op, L)         conv over the flat padded grid (padding columns
        #                        are garbage; the wrapper drops them)
        #
        # Output lane j = n*Hp*Wp + h*Wp + w needs input lane j + kh*Wp + kw, so
        # every (kh, kw) tap is a static lane-shifted slice of the same array:
        # no in-kernel im2col, reshape or concatenation.
        x = x_ref[...]
        acc = jnp.zeros((Op, L), jnp.float32)
        for kh in range(K):
            for kw in range(K):
                s = kh * Wp + kw
                acc = acc + jnp.dot(
                    w_ref[kh, kw],                  # (Op, Cp) tap weights
                    x[:, s:s + L],                  # (Cp, L) lane-shifted view
                    preferred_element_type=jnp.float32)
        o_ref[...] = acc

    conv = pl.pallas_call(
        kernel,
        out_shape=jax.ShapeDtypeStruct((Op, L), jnp.float32),
        in_specs=[
            pl.BlockSpec(memory_space=pltpu.MemorySpace.VMEM),   # taps (tiny)
            pl.BlockSpec(memory_space=pltpu.MemorySpace.VMEM),   # flat padded input
        ],
        out_specs=pl.BlockSpec(memory_space=pltpu.MemorySpace.VMEM),
    )

    def run(x, w):
        # Reflect padding (== padding_mode='reflect' in PyTorch) — layout only.
        x_pad = jnp.pad(x, ((0, 0), (0, 0), (pad, pad), (pad, pad)), mode="reflect")
        # Flatten (n, h', w') into one lane axis, channels on sublanes.  Zero-pad
        # channels to the 8-sublane granule and lanes so the largest tap shift
        # stays in bounds.  Total kernel input is ~Cp*Lx*4 bytes (tens of KB),
        # vs. the previous (C*K*K, H*W) im2col materialized in HBM.
        x_flat = jnp.transpose(x_pad, (1, 0, 2, 3)).reshape(C, n_valid)
        x_flat = jnp.pad(x_flat, ((0, Cp - C), (0, Lx - n_valid)))
        # Taps laid out (K, K, O, C) so the kernel slices one (Op, Cp) tap each.
        w_taps = jnp.transpose(w, (2, 3, 0, 1))
        w_taps = jnp.pad(w_taps, ((0, 0), (0, 0), (0, Op - O), (0, Cp - C)))

        # TODO(synk): for large images, add a grid over tiles of the flat lane
        # axis (halo = smax lanes), mark it "parallel" so v7x's two TensorCores
        # split the work, and set pltpu.CompilerParams(vmem_limit_bytes=...)
        # against v7x's 64 MiB (32 MiB scoped-default) VMEM.
        y = conv(w_taps, x_flat)                                  # (Op, L)
        y = y[:O, :n_valid].reshape(O, N, Hp, Wp)[:, :, :H, :W]   # drop pad/garbage
        return jnp.transpose(y, (1, 0, 2, 3))                     # (N, O, H, W)

    return jax.jit(run)


# ----------------------------------------------------------------------------
# Demo
# ----------------------------------------------------------------------------
if __name__ == "__main__":
    N, Cin, Cout, H, W, K = 2, 3, 4, 16, 16, 5

    key = jax.random.PRNGKey(0)
    x = jax.random.normal(key, (N, Cin, H, W), dtype=jnp.float32)

    # Deterministic DoG parameters (what `initialize` would receive)
    r_c = np.array([1.0, 1.5, 2.0, 1.2], np.float32)            # (out_channels,)
    r_s = np.array([2.5, 3.0, 3.5, 2.8], np.float32)            # (out_channels,)
    opponency = np.array([                                       # (out_channels, 2, in_channels)
        [[1.0, -1.0, 0.0], [-0.8, 0.9, 0.1]],
        [[0.0, 1.0, -1.0], [0.2, -0.9, 0.8]],
        [[0.5, 0.5, 0.5], [-0.4, -0.4, -0.4]],
        [[-1.0, 0.2, 1.0], [0.9, -0.1, -0.8]],
    ], np.float32)

    w = jnp.asarray(build_dog_weights(Cin, Cout, K, r_c, r_s, opponency))

    dog_conv = make_dog_conv(N, Cin, Cout, H, W, K)
    out = jax.block_until_ready(dog_conv(x, w))

    # Reference check (XLA conv on the same reflect-padded input)
    x_pad = jnp.pad(x, ((0, 0), (0, 0), (K // 2, K // 2), (K // 2, K // 2)), mode="reflect")
    ref = jax.lax.conv_general_dilated(
        x_pad, w, window_strides=(1, 1), padding="VALID",
        dimension_numbers=("NCHW", "OIHW", "NCHW"))
    assert out.shape == (N, Cout, H, W)
    assert jnp.allclose(out, ref, atol=1e-4, rtol=1e-4)

    print("KERNEL_OK")
</pallas_src>

<mosaic_0001>
module attributes {stable_mosaic.version = 11 : i64} {
  func.func @kernel(%arg0: memref<5x5x8x8xf32, #tpu.memory_space<vmem>>, %arg1: memref<8x1024xf32, #tpu.memory_space<vmem>>, %arg2: memref<8x896xf32, #tpu.memory_space<vmem>>) attributes {dimension_semantics = [], scalar_prefetch = 0 : i64, scratch_operands = 0 : i64, tpu.core_type = #tpu.core_type<tc>} {
    %c0 = arith.constant 0 : index
    %c0_0 = arith.constant 0 : index
    %0 = vector.load %arg1[%c0, %c0_0] : memref<8x1024xf32, #tpu.memory_space<vmem>>, vector<8x1024xf32>
    %cst = arith.constant 0.000000e+00 : f32
    %1 = vector.broadcast %cst : f32 to vector<8x896xf32>
    %c0_1 = arith.constant 0 : index
    %c0_2 = arith.constant 0 : index
    %c0_3 = arith.constant 0 : index
    %c0_4 = arith.constant 0 : index
    %2 = vector.load %arg0[%c0_1, %c0_2, %c0_3, %c0_4] : memref<5x5x8x8xf32, #tpu.memory_space<vmem>>, vector<1x1x8x8xf32>
    %3 = vector.shape_cast %2 : vector<1x1x8x8xf32> to vector<8x8xf32>
    %4 = vector.extract_strided_slice %0 {offsets = [0, 0], sizes = [8, 896], strides = [1, 1]} : vector<8x1024xf32> to vector<8x896xf32>
    %cst_5 = arith.constant dense<0.000000e+00> : vector<8x896xf32>
    %5 = tpu.matmul %3, %4, %cst_5 {dimension_numbers = #tpu.dot_dimension_numbers<[1], [0], [0], [1], [0, 0, 1, 1], [], []>} : vector<8x8xf32>, vector<8x896xf32>, vector<8x896xf32> -> vector<8x896xf32>
    %6 = arith.addf %1, %5 : vector<8x896xf32>
    %c0_6 = arith.constant 0 : index
    %c1 = arith.constant 1 : index
    %c0_7 = arith.constant 0 : index
    %c0_8 = arith.constant 0 : index
    %7 = vector.load %arg0[%c0_6, %c1, %c0_7, %c0_8] : memref<5x5x8x8xf32, #tpu.memory_space<vmem>>, vector<1x1x8x8xf32>
    %8 = vector.shape_cast %7 : vector<1x1x8x8xf32> to vector<8x8xf32>
    %9 = vector.extract_strided_slice %0 {offsets = [0, 1], sizes = [8, 896], strides = [1, 1]} : vector<8x1024xf32> to vector<8x896xf32>
    %cst_9 = arith.constant dense<0.000000e+00> : vector<8x896xf32>
    %10 = tpu.matmul %8, %9, %cst_9 {dimension_numbers = #tpu.dot_dimension_numbers<[1], [0], [0], [1], [0, 0, 1, 1], [], []>} : vector<8x8xf32>, vector<8x896xf32>, vector<8x896xf32> -> vector<8x896xf32>
    %11 = arith.addf %6, %10 : vector<8x896xf32>
    %c0_10 = arith.constant 0 : index
    %c2 = arith.constant 2 : index
    %c0_11 = arith.constant 0 : index
    %c0_12 = arith.constant 0 : index
    %12 = vector.load %arg0[%c0_10, %c2, %c0_11, %c0_12] : memref<5x5x8x8xf32, #tpu.memory_space<vmem>>, vector<1x1x8x8xf32>
    %13 = vector.shape_cast %12 : vector<1x1x8x8xf32> to vector<8x8xf32>
    %14 = vector.extract_strided_slice %0 {offsets = [0, 2], sizes = [8, 896], strides = [1, 1]} : vector<8x1024xf32> to vector<8x896xf32>
    %cst_13 = arith.constant dense<0.000000e+00> : vector<8x896xf32>
    %15 = tpu.matmul %13, %14, %cst_13 {dimension_numbers = #tpu.dot_dimension_numbers<[1], [0], [0], [1], [0, 0, 1, 1], [], []>} : vector<8x8xf32>, vector<8x896xf32>, vector<8x896xf32> -> vector<8x896xf32>
    %16 = arith.addf %11, %15 : vector<8x896xf32>
    %c0_14 = arith.constant 0 : index
    %c3 = arith.constant 3 : index
    %c0_15 = arith.constant 0 : index
    %c0_16 = arith.constant 0 : index
    %17 = vector.load %arg0[%c0_14, %c3, %c0_15, %c0_16] : memref<5x5x8x8xf32, #tpu.memory_space<vmem>>, vector<1x1x8x8xf32>
    %18 = vector.shape_cast %17 : vector<1x1x8x8xf32> to vector<8x8xf32>
    %19 = vector.extract_strided_slice %0 {offsets = [0, 3], sizes = [8, 896], strides = [1, 1]} : vector<8x1024xf32> to vector<8x896xf32>
    %cst_17 = arith.constant dense<0.000000e+00> : vector<8x896xf32>
    %20 = tpu.matmul %18, %19, %cst_17 {dimension_numbers = #tpu.dot_dimension_numbers<[1], [0], [0], [1], [0, 0, 1, 1], [], []>} : vector<8x8xf32>, vector<8x896xf32>, vector<8x896xf32> -> vector<8x896xf32>
    %21 = arith.addf %16, %20 : vector<8x896xf32>
    %c0_18 = arith.constant 0 : index
    %c4 = arith.constant 4 : index
    %c0_19 = arith.constant 0 : index
    %c0_20 = arith.constant 0 : index
    %22 = vector.load %arg0[%c0_18, %c4, %c0_19, %c0_20] : memref<5x5x8x8xf32, #tpu.memory_space<vmem>>, vector<1x1x8x8xf32>
    %23 = vector.shape_cast %22 : vector<1x1x8x8xf32> to vector<8x8xf32>
    %24 = vector.extract_strided_slice %0 {offsets = [0, 4], sizes = [8, 896], strides = [1, 1]} : vector<8x1024xf32> to vector<8x896xf32>
    %cst_21 = arith.constant dense<0.000000e+00> : vector<8x896xf32>
    %25 = tpu.matmul %23, %24, %cst_21 {dimension_numbers = #tpu.dot_dimension_numbers<[1], [0], [0], [1], [0, 0, 1, 1], [], []>} : vector<8x8xf32>, vector<8x896xf32>, vector<8x896xf32> -> vector<8x896xf32>
    %26 = arith.addf %21, %25 : vector<8x896xf32>
    %c1_22 = arith.constant 1 : index
    %c0_23 = arith.constant 0 : index
    %c0_24 = arith.constant 0 : index
    %c0_25 = arith.constant 0 : index
    %27 = vector.load %arg0[%c1_22, %c0_23, %c0_24, %c0_25] : memref<5x5x8x8xf32, #tpu.memory_space<vmem>>, vector<1x1x8x8xf32>
    %28 = vector.shape_cast %27 : vector<1x1x8x8xf32> to vector<8x8xf32>
    %29 = vector.extract_strided_slice %0 {offsets = [0, 20], sizes = [8, 896], strides = [1, 1]} : vector<8x1024xf32> to vector<8x896xf32>
    %cst_26 = arith.constant dense<0.000000e+00> : vector<8x896xf32>
    %30 = tpu.matmul %28, %29, %cst_26 {dimension_numbers = #tpu.dot_dimension_numbers<[1], [0], [0], [1], [0, 0, 1, 1], [], []>} : vector<8x8xf32>, vector<8x896xf32>, vector<8x896xf32> -> vector<8x896xf32>
    %31 = arith.addf %26, %30 : vector<8x896xf32>
    %c1_27 = arith.constant 1 : index
    %c1_28 = arith.constant 1 : index
    %c0_29 = arith.constant 0 : index
    %c0_30 = arith.constant 0 : index
    %32 = vector.load %arg0[%c1_27, %c1_28, %c0_29, %c0_30] : memref<5x5x8x8xf32, #tpu.memory_space<vmem>>, vector<1x1x8x8xf32>
    %33 = vector.shape_cast %32 : vector<1x1x8x8xf32> to vector<8x8xf32>
    %34 = vector.extract_strided_slice %0 {offsets = [0, 21], sizes = [8, 896], strides = [1, 1]} : vector<8x1024xf32> to vector<8x896xf32>
    %cst_31 = arith.constant dense<0.000000e+00> : vector<8x896xf32>
    %35 = tpu.matmul %33, %34, %cst_31 {dimension_numbers = #tpu.dot_dimension_numbers<[1], [0], [0], [1], [0, 0, 1, 1], [], []>} : vector<8x8xf32>, vector<8x896xf32>, vector<8x896xf32> -> vector<8x896xf32>
    %36 = arith.addf %31, %35 : vector<8x896xf32>
    %c1_32 = arith.constant 1 : index
    %c2_33 = arith.constant 2 : index
    %c0_34 = arith.constant 0 : index
    %c0_35 = arith.constant 0 : index
    %37 = vector.load %arg0[%c1_32, %c2_33, %c0_34, %c0_35] : memref<5x5x8x8xf32, #tpu.memory_space<vmem>>, vector<1x1x8x8xf32>
    %38 = vector.shape_cast %37 : vector<1x1x8x8xf32> to vector<8x8xf32>
    %39 = vector.extract_strided_slice %0 {offsets = [0, 22], sizes = [8, 896], strides = [1, 1]} : vector<8x1024xf32> to vector<8x896xf32>
    %cst_36 = arith.constant dense<0.000000e+00> : vector<8x896xf32>
    %40 = tpu.matmul %38, %39, %cst_36 {dimension_numbers = #tpu.dot_dimension_numbers<[1], [0], [0], [1], [0, 0, 1, 1], [], []>} : vector<8x8xf32>, vector<8x896xf32>, vector<8x896xf32> -> vector<8x896xf32>
    %41 = arith.addf %36, %40 : vector<8x896xf32>
    %c1_37 = arith.constant 1 : index
    %c3_38 = arith.constant 3 : index
    %c0_39 = arith.constant 0 : index
    %c0_40 = arith.constant 0 : index
    %42 = vector.load %arg0[%c1_37, %c3_38, %c0_39, %c0_40] : memref<5x5x8x8xf32, #tpu.memory_space<vmem>>, vector<1x1x8x8xf32>
    %43 = vector.shape_cast %42 : vector<1x1x8x8xf32> to vector<8x8xf32>
    %44 = vector.extract_strided_slice %0 {offsets = [0, 23], sizes = [8, 896], strides = [1, 1]} : vector<8x1024xf32> to vector<8x896xf32>
    %cst_41 = arith.constant dense<0.000000e+00> : vector<8x896xf32>
    %45 = tpu.matmul %43, %44, %cst_41 {dimension_numbers = #tpu.dot_dimension_numbers<[1], [0], [0], [1], [0, 0, 1, 1], [], []>} : vector<8x8xf32>, vector<8x896xf32>, vector<8x896xf32> -> vector<8x896xf32>
    %46 = arith.addf %41, %45 : vector<8x896xf32>
    %c1_42 = arith.constant 1 : index
    %c4_43 = arith.constant 4 : index
    %c0_44 = arith.constant 0 : index
    %c0_45 = arith.constant 0 : index
    %47 = vector.load %arg0[%c1_42, %c4_43, %c0_44, %c0_45] : memref<5x5x8x8xf32, #tpu.memory_space<vmem>>, vector<1x1x8x8xf32>
    %48 = vector.shape_cast %47 : vector<1x1x8x8xf32> to vector<8x8xf32>
    %49 = vector.extract_strided_slice %0 {offsets = [0, 24], sizes = [8, 896], strides = [1, 1]} : vector<8x1024xf32> to vector<8x896xf32>
    %cst_46 = arith.constant dense<0.000000e+00> : vector<8x896xf32>
    %50 = tpu.matmul %48, %49, %cst_46 {dimension_numbers = #tpu.dot_dimension_numbers<[1], [0], [0], [1], [0, 0, 1, 1], [], []>} : vector<8x8xf32>, vector<8x896xf32>, vector<8x896xf32> -> vector<8x896xf32>
    %51 = arith.addf %46, %50 : vector<8x896xf32>
    %c2_47 = arith.constant 2 : index
    %c0_48 = arith.constant 0 : index
    %c0_49 = arith.constant 0 : index
    %c0_50 = arith.constant 0 : index
    %52 = vector.load %arg0[%c2_47, %c0_48, %c0_49, %c0_50] : memref<5x5x8x8xf32, #tpu.memory_space<vmem>>, vector<1x1x8x8xf32>
    %53 = vector.shape_cast %52 : vector<1x1x8x8xf32> to vector<8x8xf32>
    %54 = vector.extract_strided_slice %0 {offsets = [0, 40], sizes = [8, 896], strides = [1, 1]} : vector<8x1024xf32> to vector<8x896xf32>
    %cst_51 = arith.constant dense<0.000000e+00> : vector<8x896xf32>
    %55 = tpu.matmul %53, %54, %cst_51 {dimension_numbers = #tpu.dot_dimension_numbers<[1], [0], [0], [1], [0, 0, 1, 1], [], []>} : vector<8x8xf32>, vector<8x896xf32>, vector<8x896xf32> -> vector<8x896xf32>
    %56 = arith.addf %51, %55 : vector<8x896xf32>
    %c2_52 = arith.constant 2 : index
    %c1_53 = arith.constant 1 : index
    %c0_54 = arith.constant 0 : index
    %c0_55 = arith.constant 0 : index
    %57 = vector.load %arg0[%c2_52, %c1_53, %c0_54, %c0_55] : memref<5x5x8x8xf32, #tpu.memory_space<vmem>>, vector<1x1x8x8xf32>
    %58 = vector.shape_cast %57 : vector<1x1x8x8xf32> to vector<8x8xf32>
    %59 = vector.extract_strided_slice %0 {offsets = [0, 41], sizes = [8, 896], strides = [1, 1]} : vector<8x1024xf32> to vector<8x896xf32>
    %cst_56 = arith.constant dense<0.000000e+00> : vector<8x896xf32>
    %60 = tpu.matmul %58, %59, %cst_56 {dimension_numbers = #tpu.dot_dimension_numbers<[1], [0], [0], [1], [0, 0, 1, 1], [], []>} : vector<8x8xf32>, vector<8x896xf32>, vector<8x896xf32> -> vector<8x896xf32>
    %61 = arith.addf %56, %60 : vector<8x896xf32>
    %c2_57 = arith.constant 2 : index
    %c2_58 = arith.constant 2 : index
    %c0_59 = arith.constant 0 : index
    %c0_60 = arith.constant 0 : index
    %62 = vector.load %arg0[%c2_57, %c2_58, %c0_59, %c0_60] : memref<5x5x8x8xf32, #tpu.memory_space<vmem>>, vector<1x1x8x8xf32>
    %63 = vector.shape_cast %62 : vector<1x1x8x8xf32> to vector<8x8xf32>
    %64 = vector.extract_strided_slice %0 {offsets = [0, 42], sizes = [8, 896], strides = [1, 1]} : vector<8x1024xf32> to vector<8x896xf32>
    %cst_61 = arith.constant dense<0.000000e+00> : vector<8x896xf32>
    %65 = tpu.matmul %63, %64, %cst_61 {dimension_numbers = #tpu.dot_dimension_numbers<[1], [0], [0], [1], [0, 0, 1, 1], [], []>} : vector<8x8xf32>, vector<8x896xf32>, vector<8x896xf32> -> vector<8x896xf32>
    %66 = arith.addf %61, %65 : vector<8x896xf32>
    %c2_62 = arith.constant 2 : index
    %c3_63 = arith.constant 3 : index
    %c0_64 = arith.constant 0 : index
    %c0_65 = arith.constant 0 : index
    %67 = vector.load %arg0[%c2_62, %c3_63, %c0_64, %c0_65] : memref<5x5x8x8xf32, #tpu.memory_space<vmem>>, vector<1x1x8x8xf32>
    %68 = vector.shape_cast %67 : vector<1x1x8x8xf32> to vector<8x8xf32>
    %69 = vector.extract_strided_slice %0 {offsets = [0, 43], sizes = [8, 896], strides = [1, 1]} : vector<8x1024xf32> to vector<8x896xf32>
    %cst_66 = arith.constant dense<0.000000e+00> : vector<8x896xf32>
    %70 = tpu.matmul %68, %69, %cst_66 {dimension_numbers = #tpu.dot_dimension_numbers<[1], [0], [0], [1], [0, 0, 1, 1], [], []>} : vector<8x8xf32>, vector<8x896xf32>, vector<8x896xf32> -> vector<8x896xf32>
    %71 = arith.addf %66, %70 : vector<8x896xf32>
    %c2_67 = arith.constant 2 : index
    %c4_68 = arith.constant 4 : index
    %c0_69 = arith.constant 0 : index
    %c0_70 = arith.constant 0 : index
    %72 = vector.load %arg0[%c2_67, %c4_68, %c0_69, %c0_70] : memref<5x5x8x8xf32, #tpu.memory_space<vmem>>, vector<1x1x8x8xf32>
    %73 = vector.shape_cast %72 : vector<1x1x8x8xf32> to vector<8x8xf32>
    %74 = vector.extract_strided_slice %0 {offsets = [0, 44], sizes = [8, 896], strides = [1, 1]} : vector<8x1024xf32> to vector<8x896xf32>
    %cst_71 = arith.constant dense<0.000000e+00> : vector<8x896xf32>
    %75 = tpu.matmul %73, %74, %cst_71 {dimension_numbers = #tpu.dot_dimension_numbers<[1], [0], [0], [1], [0, 0, 1, 1], [], []>} : vector<8x8xf32>, vector<8x896xf32>, vector<8x896xf32> -> vector<8x896xf32>
    %76 = arith.addf %71, %75 : vector<8x896xf32>
    %c3_72 = arith.constant 3 : index
    %c0_73 = arith.constant 0 : index
    %c0_74 = arith.constant 0 : index
    %c0_75 = arith.constant 0 : index
    %77 = vector.load %arg0[%c3_72, %c0_73, %c0_74, %c0_75] : memref<5x5x8x8xf32, #tpu.memory_space<vmem>>, vector<1x1x8x8xf32>
    %78 = vector.shape_cast %77 : vector<1x1x8x8xf32> to vector<8x8xf32>
    %79 = vector.extract_strided_slice %0 {offsets = [0, 60], sizes = [8, 896], strides = [1, 1]} : vector<8x1024xf32> to vector<8x896xf32>
    %cst_76 = arith.constant dense<0.000000e+00> : vector<8x896xf32>
    %80 = tpu.matmul %78, %79, %cst_76 {dimension_numbers = #tpu.dot_dimension_numbers<[1], [0], [0], [1], [0, 0, 1, 1], [], []>} : vector<8x8xf32>, vector<8x896xf32>, vector<8x896xf32> -> vector<8x896xf32>
    %81 = arith.addf %76, %80 : vector<8x896xf32>
    %c3_77 = arith.constant 3 : index
    %c1_78 = arith.constant 1 : index
    %c0_79 = arith.constant 0 : index
    %c0_80 = arith.constant 0 : index
    %82 = vector.load %arg0[%c3_77, %c1_78, %c0_79, %c0_80] : memref<5x5x8x8xf32, #tpu.memory_space<vmem>>, vector<1x1x8x8xf32>
    %83 = vector.shape_cast %82 : vector<1x1x8x8xf32> to vector<8x8xf32>
    %84 = vector.extract_strided_slice %0 {offsets = [0, 61], sizes = [8, 896], strides = [1, 1]} : vector<8x1024xf32> to vector<8x896xf32>
    %cst_81 = arith.constant dense<0.000000e+00> : vector<8x896xf32>
    %85 = tpu.matmul %83, %84, %cst_81 {dimension_numbers = #tpu.dot_dimension_numbers<[1], [0], [0], [1], [0, 0, 1, 1], [], []>} : vector<8x8xf32>, vector<8x896xf32>, vector<8x896xf32> -> vector<8x896xf32>
    %86 = arith.addf %81, %85 : vector<8x896xf32>
    %c3_82 = arith.constant 3 : index
    %c2_83 = arith.constant 2 : index
    %c0_84 = arith.constant 0 : index
    %c0_85 = arith.constant 0 : index
    %87 = vector.load %arg0[%c3_82, %c2_83, %c0_84, %c0_85] : memref<5x5x8x8xf32, #tpu.memory_space<vmem>>, vector<1x1x8x8xf32>
    %88 = vector.shape_cast %87 : vector<1x1x8x8xf32> to vector<8x8xf32>
    %89 = vector.extract_strided_slice %0 {offsets = [0, 62], sizes = [8, 896], strides = [1, 1]} : vector<8x1024xf32> to vector<8x896xf32>
    %cst_86 = arith.constant dense<0.000000e+00> : vector<8x896xf32>
    %90 = tpu.matmul %88, %89, %cst_86 {dimension_numbers = #tpu.dot_dimension_numbers<[1], [0], [0], [1], [0, 0, 1, 1], [], []>} : vector<8x8xf32>, vector<8x896xf32>, vector<8x896xf32> -> vector<8x896xf32>
    %91 = arith.addf %86, %90 : vector<8x896xf32>
    %c3_87 = arith.constant 3 : index
    %c3_88 = arith.constant 3 : index
    %c0_89 = arith.constant 0 : index
    %c0_90 = arith.constant 0 : index
    %92 = vector.load %arg0[%c3_87, %c3_88, %c0_89, %c0_90] : memref<5x5x8x8xf32, #tpu.memory_space<vmem>>, vector<1x1x8x8xf32>
    %93 = vector.shape_cast %92 : vector<1x1x8x8xf32> to vector<8x8xf32>
    %94 = vector.extract_strided_slice %0 {offsets = [0, 63], sizes = [8, 896], strides = [1, 1]} : vector<8x1024xf32> to vector<8x896xf32>
    %cst_91 = arith.constant dense<0.000000e+00> : vector<8x896xf32>
    %95 = tpu.matmul %93, %94, %cst_91 {dimension_numbers = #tpu.dot_dimension_numbers<[1], [0], [0], [1], [0, 0, 1, 1], [], []>} : vector<8x8xf32>, vector<8x896xf32>, vector<8x896xf32> -> vector<8x896xf32>
    %96 = arith.addf %91, %95 : vector<8x896xf32>
    %c3_92 = arith.constant 3 : index
    %c4_93 = arith.constant 4 : index
    %c0_94 = arith.constant 0 : index
    %c0_95 = arith.constant 0 : index
    %97 = vector.load %arg0[%c3_92, %c4_93, %c0_94, %c0_95] : memref<5x5x8x8xf32, #tpu.memory_space<vmem>>, vector<1x1x8x8xf32>
    %98 = vector.shape_cast %97 : vector<1x1x8x8xf32> to vector<8x8xf32>
    %99 = vector.extract_strided_slice %0 {offsets = [0, 64], sizes = [8, 896], strides = [1, 1]} : vector<8x1024xf32> to vector<8x896xf32>
    %cst_96 = arith.constant dense<0.000000e+00> : vector<8x896xf32>
    %100 = tpu.matmul %98, %99, %cst_96 {dimension_numbers = #tpu.dot_dimension_numbers<[1], [0], [0], [1], [0, 0, 1, 1], [], []>} : vector<8x8xf32>, vector<8x896xf32>, vector<8x896xf32> -> vector<8x896xf32>
    %101 = arith.addf %96, %100 : vector<8x896xf32>
    %c4_97 = arith.constant 4 : index
    %c0_98 = arith.constant 0 : index
    %c0_99 = arith.constant 0 : index
    %c0_100 = arith.constant 0 : index
    %102 = vector.load %arg0[%c4_97, %c0_98, %c0_99, %c0_100] : memref<5x5x8x8xf32, #tpu.memory_space<vmem>>, vector<1x1x8x8xf32>
    %103 = vector.shape_cast %102 : vector<1x1x8x8xf32> to vector<8x8xf32>
    %104 = vector.extract_strided_slice %0 {offsets = [0, 80], sizes = [8, 896], strides = [1, 1]} : vector<8x1024xf32> to vector<8x896xf32>
    %cst_101 = arith.constant dense<0.000000e+00> : vector<8x896xf32>
    %105 = tpu.matmul %103, %104, %cst_101 {dimension_numbers = #tpu.dot_dimension_numbers<[1], [0], [0], [1], [0, 0, 1, 1], [], []>} : vector<8x8xf32>, vector<8x896xf32>, vector<8x896xf32> -> vector<8x896xf32>
    %106 = arith.addf %101, %105 : vector<8x896xf32>
    %c4_102 = arith.constant 4 : index
    %c1_103 = arith.constant 1 : index
    %c0_104 = arith.constant 0 : index
    %c0_105 = arith.constant 0 : index
    %107 = vector.load %arg0[%c4_102, %c1_103, %c0_104, %c0_105] : memref<5x5x8x8xf32, #tpu.memory_space<vmem>>, vector<1x1x8x8xf32>
    %108 = vector.shape_cast %107 : vector<1x1x8x8xf32> to vector<8x8xf32>
    %109 = vector.extract_strided_slice %0 {offsets = [0, 81], sizes = [8, 896], strides = [1, 1]} : vector<8x1024xf32> to vector<8x896xf32>
    %cst_106 = arith.constant dense<0.000000e+00> : vector<8x896xf32>
    %110 = tpu.matmul %108, %109, %cst_106 {dimension_numbers = #tpu.dot_dimension_numbers<[1], [0], [0], [1], [0, 0, 1, 1], [], []>} : vector<8x8xf32>, vector<8x896xf32>, vector<8x896xf32> -> vector<8x896xf32>
    %111 = arith.addf %106, %110 : vector<8x896xf32>
    %c4_107 = arith.constant 4 : index
    %c2_108 = arith.constant 2 : index
    %c0_109 = arith.constant 0 : index
    %c0_110 = arith.constant 0 : index
    %112 = vector.load %arg0[%c4_107, %c2_108, %c0_109, %c0_110] : memref<5x5x8x8xf32, #tpu.memory_space<vmem>>, vector<1x1x8x8xf32>
    %113 = vector.shape_cast %112 : vector<1x1x8x8xf32> to vector<8x8xf32>
    %114 = vector.extract_strided_slice %0 {offsets = [0, 82], sizes = [8, 896], strides = [1, 1]} : vector<8x1024xf32> to vector<8x896xf32>
    %cst_111 = arith.constant dense<0.000000e+00> : vector<8x896xf32>
    %115 = tpu.matmul %113, %114, %cst_111 {dimension_numbers = #tpu.dot_dimension_numbers<[1], [0], [0], [1], [0, 0, 1, 1], [], []>} : vector<8x8xf32>, vector<8x896xf32>, vector<8x896xf32> -> vector<8x896xf32>
    %116 = arith.addf %111, %115 : vector<8x896xf32>
    %c4_112 = arith.constant 4 : index
    %c3_113 = arith.constant 3 : index
    %c0_114 = arith.constant 0 : index
    %c0_115 = arith.constant 0 : index
    %117 = vector.load %arg0[%c4_112, %c3_113, %c0_114, %c0_115] : memref<5x5x8x8xf32, #tpu.memory_space<vmem>>, vector<1x1x8x8xf32>
    %118 = vector.shape_cast %117 : vector<1x1x8x8xf32> to vector<8x8xf32>
    %119 = vector.extract_strided_slice %0 {offsets = [0, 83], sizes = [8, 896], strides = [1, 1]} : vector<8x1024xf32> to vector<8x896xf32>
    %cst_116 = arith.constant dense<0.000000e+00> : vector<8x896xf32>
    %120 = tpu.matmul %118, %119, %cst_116 {dimension_numbers = #tpu.dot_dimension_numbers<[1], [0], [0], [1], [0, 0, 1, 1], [], []>} : vector<8x8xf32>, vector<8x896xf32>, vector<8x896xf32> -> vector<8x896xf32>
    %121 = arith.addf %116, %120 : vector<8x896xf32>
    %c4_117 = arith.constant 4 : index
    %c4_118 = arith.constant 4 : index
    %c0_119 = arith.constant 0 : index
    %c0_120 = arith.constant 0 : index
    %122 = vector.load %arg0[%c4_117, %c4_118, %c0_119, %c0_120] : memref<5x5x8x8xf32, #tpu.memory_space<vmem>>, vector<1x1x8x8xf32>
    %123 = vector.shape_cast %122 : vector<1x1x8x8xf32> to vector<8x8xf32>
    %124 = vector.extract_strided_slice %0 {offsets = [0, 84], sizes = [8, 896], strides = [1, 1]} : vector<8x1024xf32> to vector<8x896xf32>
    %cst_121 = arith.constant dense<0.000000e+00> : vector<8x896xf32>
    %125 = tpu.matmul %123, %124, %cst_121 {dimension_numbers = #tpu.dot_dimension_numbers<[1], [0], [0], [1], [0, 0, 1, 1], [], []>} : vector<8x8xf32>, vector<8x896xf32>, vector<8x896xf32> -> vector<8x896xf32>
    %126 = arith.addf %121, %125 : vector<8x896xf32>
    %c0_122 = arith.constant 0 : index
    %c0_123 = arith.constant 0 : index
    %127 = vector.load %arg2[%c0_122, %c0_123] : memref<8x896xf32, #tpu.memory_space<vmem>>, vector<8x896xf32>
    tpu.vector_store %arg2[%c0_122, %c0_123], %126 {strides = array<i32>} : memref<8x896xf32, #tpu.memory_space<vmem>>, vector<8x896xf32>,
    return
  }
}

</mosaic_0001>

<bundles_post_ra>
// kernel: run.1
= control target key start
LH: loop header
LB: loop body
LE: loop exit
PB: predicated region body
PF: predicated region fallthrough
CT: control target
= control target key end

     0   :  { %s5274_s17 = smov 127   ;;  %s5275_s22 = smov 126   ;;  %vm46_vm0 = vcmask 1039360   ;;  %vm61_vm1 = vcmask 64512   ;;  %vm366_vm2 = vcmask 1031168   ;;  %vm549_vm3 = vcmask 1022976   ;;  %s6351_s1 = inlined_call_operand.vmem [shape: f32[8,1024], index: 1, kind: input, shape index: {}]   ;;  %s6352_s0 = inlined_call_operand.vmem [shape: f32[5,5,8,8], index: 0, kind: input, shape index: {}]   ;;  %s6353_s2 = inlined_call_operand.vmem [shape: f32[8,896], index: 2, kind: output, shape index: {}]  }
   0x1   :  { %v5316_v0 = vld [vmem:[%s6351_s1 + $0x20] sm:$0xff]  ;;  %v5321_v1 = vld [vmem:[%s6351_s1 + $0x28] sm:$0xff]  ;;  %v5343_v6 = vld [vmem:[%s6351_s1 + $0x30] sm:$0xff]  ;;  %s5276_s27 = smov 125   ;;  %s5277_s28 = smov 124   ;;  %vm732_vm4 = vcmask 1014784  }
   0x2   :  { %v5326_v2 = vld [vmem:[%s6351_s1] sm:$0xff]  ;;  %v4801_v3 = vpack.i.bf16 %v5321_v1, %v5316_v0  ;;  %v5333_v4 = vld [vmem:[%s6351_s1 + $0x8] sm:$0xff]  ;;  %v5348_v7 = vld [vmem:[%s6351_s1 + $0x38] sm:$0xff]  ;;  %s5278_s29 = smov 108   ;;  %s5279_s30 = smov 107   ;;  %v5392_v13 = vpack.i.bf16 %v5343_v6, %v5316_v0  ;;  %v5456_v43 = vpack.i.bf16 %v5343_v6, %v5321_v1  ;;  %vm915_vm5 = vcmask 883712  }
   0x3   :  { %v5337_v5 = vpack.i.bf16 %v5333_v4, %v5326_v2  ;;  %v5354_v8 = vld [vmem:[%s6351_s1 + $0x10] sm:$0xff]  ;;  %v5359_v9 = vld [vmem:[%s6351_s1 + $0x18] sm:$0xff]  ;;  %v5363_v10 = vpack.i.bf16 %v5348_v7, %v5343_v6  ;;  %s5280_s3 = smov 106   ;;  %s5281_s4 = smov 105   ;;  %v5397_v14 = vpack.i.bf16 %v5321_v1, %v5348_v7  ;;  %v4568_v26 = vld [vmem:[%s6352_s0 + $0x8] sm:$0xff]  ;;  %v5439_v31 = vpack.i.bf16 %v5348_v7, %v5316_v0 }
   0x4   :  { %4802 = vrot.lane.b32.xlu1 %v4801_v3, %s5274_s17  ;;  %v5367_v11 = vpack.i.bf16 %v5359_v9, %v5354_v8  ;;  %v4931_v12 = vpack.i.bf16 %v5354_v8, %v5326_v2  ;;  %v5402_v15 = vpack.i.bf16 %v5316_v0, %v5359_v9  ;;  %v5406_v16 = vpack.i.bf16 %v5321_v1, %v5354_v8  ;;  %s5282_s5 = smov 104   ;;  %s5283_s6 = smov 88   ;;  %v19_v48 = vld [vmem:[%s6352_s0] sm:$0xff] }
   0x5   :  { %4792 = vrot.lane.b32.xlu0 %v5337_v5, %s5274_s17  ;;  %4812 = vrot.lane.b32.xlu2 %v5337_v5, %s5275_s22  ;;  %v4936_v17 = vpack.i.bf16 %v5333_v4, %v5359_v9  ;;  %v5418_v18 = vpack.i.bf16 %v5316_v0, %v5354_v8  ;;  %v5424_v20 = vpack.i.bf16 %v5354_v8, %v5333_v4  ;;  %s5284_s7 = smov 87   ;;  %s5285_s12 = smov 86   ;;  %vm1098_vm6 = vcmask 875520  }
   0x6   :  { %v5479_v54 = vpack.i.bf16 %v5359_v9, %v5321_v1  ;;  %s5286_s13 = smov 85   ;;  %s5287_s18 = smov 84   ;;  %vm1281_vm7 = vcmask 867328   ;;  %vm1464_vm8 = vcmask 859136   ;;  %vm1647_vm9 = vcmask 850944  }
   0x7   :  { %s5288_s21 = smov 68   ;;  %s5289_s24 = smov 67   ;;  %vm1830_vm10 = vcmask 719872   ;;  %vm2013_vm11 = vcmask 711680   ;;  %vm2196_vm12 = vcmask 703488   ;;  %vm2379_vm13 = vcmask 695296  }
   0x8   :  { %s5293_s10 = smov 48   ;;  %s5294_s23 = smov 47   ;;  %vm2562_vm14 = vcmask 687104   ;;  %vm2745_vm15 = vcmask 556032  }
   0xc   :  { %4807 = vrot.lane.b32.xlu1 %v5363_v10, %s5274_s17 }
   0xd   :  { %4797 = vrot.lane.b32.xlu0 %v5367_v11, %s5274_s17  ;;  %4817 = vrot.lane.b32.xlu2 %v5367_v11, %s5275_s22 }
  0x14   :  { %4827 = vrot.lane.b32.xlu1 %v5363_v10, %s5275_s22 }
  0x15   :  { %4822 = vrot.lane.b32.xlu0 %v4801_v3, %s5275_s22  ;;  %4832 = vrot.lane.b32.xlu2 %v5337_v5, %s5276_s27 }
  0x1c   :  { %4842 = vrot.lane.b32.xlu1 %v4801_v3, %s5276_s27 }
  0x1d   :  { %4837 = vrot.lane.b32.xlu0 %v5367_v11, %s5276_s27  ;;  %4847 = vrot.lane.b32.xlu2 %v5363_v10, %s5276_s27  ;;  %s5290_s27 = smov 66  }
  0x24   :  { %4857 = vrot.lane.b32.xlu1 %v5367_v11, %s5277_s28 }
  0x25   :  { %4852 = vrot.lane.b32.xlu0 %v5337_v5, %s5277_s28  ;;  %4862 = vrot.lane.b32.xlu2 %v4801_v3, %s5277_s28 }
  0x2c   :  { %4872 = vrot.lane.b32.xlu1 %v5337_v5, %s5278_s29 }
  0x2d   :  { %4867 = vrot.lane.b32.xlu0 %v5363_v10, %s5277_s28  ;;  %4877 = vrot.lane.b32.xlu2 %v5367_v11, %s5278_s29  ;;  %s5291_s28 = smov 65  }
  0x34   :  { %4887 = vrot.lane.b32.xlu1 %v5363_v10, %s5278_s29 }
  0x35   :  { %4882 = vrot.lane.b32.xlu0 %v4801_v3, %s5278_s29  ;;  %4892 = vrot.lane.b32.xlu2 %v5337_v5, %s5279_s30  ;;  %s5295_s29 = smov 46  }
  0x3c   :  { %4902 = vrot.lane.b32.xlu1 %v4801_v3, %s5279_s30 }
  0x3d   :  { %4897 = vrot.lane.b32.xlu0 %v5367_v11, %s5279_s30  ;;  %4907 = vrot.lane.b32.xlu2 %v5363_v10, %s5279_s30 }
  0x44   :  { %4917 = vrot.lane.b32.xlu1 %v5367_v11, %s5280_s3 }
  0x45   :  { %4912 = vrot.lane.b32.xlu0 %v5337_v5, %s5280_s3  ;;  %4922 = vrot.lane.b32.xlu2 %v4801_v3, %s5280_s3  ;;  %v5498_v3 = vpack.i.bf16 %v5359_v9, %v5326_v2 }
  0x4c   :  { %4932 = vrot.lane.b32.xlu1 %v4931_v12, %s5281_s4 }
  0x4d   :  { %4927 = vrot.lane.b32.xlu0 %v5363_v10, %s5280_s3  ;;  %4937 = vrot.lane.b32.xlu2 %v4936_v17, %s5281_s4 }
  0x54   :  { %4947 = vrot.lane.b32.xlu1 %v5397_v14, %s5281_s4 }
  0x55   :  { %4942 = vrot.lane.b32.xlu0 %v5392_v13, %s5281_s4  ;;  %4952 = vrot.lane.b32.xlu2 %v5337_v5, %s5282_s5  ;;  %s5296_s4 = smov 45  }
  0x5c   :  { %4962 = vrot.lane.b32.xlu1 %v5406_v16, %s5282_s5 }
  0x5d   :  { %4957 = vrot.lane.b32.xlu0 %v5402_v15, %s5282_s5  ;;  %4967 = vrot.lane.b32.xlu2 %v5337_v5, %s5283_s6 }
  0x5f   :  { %v4813_v29 = vpop.permute.xlu2 %4812 }
  0x60   :  { %v4815_v44 = vunpack.i.h.bf16 %v4813_v29  ;;  %v4814_v45 = vunpack.i.l.bf16 %v4813_v29 }
  0x62   :  { %v367_v50 = vsel %vm366_vm2, %v4814_v45, %v4815_v44 }
  0x64   :  { %4977 = vrot.lane.b32.xlu1 %v5418_v18, %s5283_s6 }
  0x65   :  { %4972 = vrot.lane.b32.xlu0 %v5363_v10, %s5282_s5  ;;  %4982 = vrot.lane.b32.xlu2 %v5479_v54, %s5283_s6  ;;  %s5292_s5 = smov 64  }
  0x67   :  { %v4818_v42 = vpop.permute.xlu2 %4817 }
  0x68   :  { %v4819_v46 = vunpack.i.l.bf16 %v4818_v42  ;;  %v4820_v47 = vunpack.i.h.bf16 %v4818_v42 }
  0x6a   :  { %v368_v51 = vsel %vm366_vm2, %v4815_v44, %v4819_v46  ;;  %v369_v53 = vsel %vm366_vm2, %v4819_v46, %v4820_v47 }
  0x6c   :  { %4992 = vrot.lane.b32.xlu1 %v5424_v20, %s5284_s7 }
  0x6d   :  { %4987 = vrot.lane.b32.xlu0 %v5363_v10, %s5283_s6  ;;  %4997 = vrot.lane.b32.xlu2 %v5498_v3, %s5284_s7 }
  0x6f   :  { %v4833_v58 = vpop.permute.xlu2 %4832 }
  0x70   :  { %v4834_v7 = vunpack.i.l.bf16 %v4833_v58 }
  0x74   :  { %5007 = vrot.lane.b32.xlu1 %v5439_v31, %s5284_s7 }
  0x75   :  { %5002 = vrot.lane.b32.xlu0 %v5456_v43, %s5284_s7  ;;  %5012 = vrot.lane.b32.xlu2 %v5367_v11, %s5285_s12  ;;  %s5297_s7 = smov 44  }
  0x76   :  { %v4803_v19 = vpop.permute.xlu1 %4802 }
  0x77   :  { %v4805_v21 = vunpack.i.h.bf16 %v4803_v19  ;;  %v4804_v22 = vunpack.i.l.bf16 %v4803_v19  ;;  %v4793_v23 = vpop.permute.xlu0 %4792  ;;  %v4583_v19 = vld [vmem:[%s6352_s0 + $0x10] sm:$0xff] }
  0x78   :  { %v4795_v24 = vunpack.i.h.bf16 %v4793_v23  ;;  %v4794_v25 = vunpack.i.l.bf16 %v4793_v23 }
  0x79   :  { %v51_v28 = vsel %vm46_vm0, %v4804_v22, %v4805_v21 }
  0x7a   :  { %v47_v27 = vsel %vm46_vm0, %v4794_v25, %v4795_v24 }
  0x7b   :  { %80 = vmatpush.msra.mxu0 %v47_v27 }
  0x7c   :  { %4569 = vmatmul.msk.f32.vlgmr.msra.gmra.mxu0 %vm61_vm1, %v4568_v26  ;;  %5022 = vrot.lane.b32.xlu1 %v5392_v13, %s5285_s12 }
  0x7d   :  { %160 = vmatpush.msrb.mxu0 %v51_v28  ;;  %5017 = vrot.lane.b32.xlu0 %v5337_v5, %s5285_s12 }
  0x7e   :  { %v4808_v30 = vpop.permute.xlu1 %4807  ;;  %5027 = vrot.lane.b32.xlu2 %v5397_v14, %s5285_s12 }
  0x7f   :  { %243 = vmatpush.msra.mxu0 %v5333_v4  ;;  %v4809_v32 = vunpack.i.l.bf16 %v4808_v30  ;;  %v4798_v33 = vpop.permute.xlu0 %4797  ;;  %v4810_v34 = vunpack.i.h.bf16 %v4808_v30  ;;  %v4835_v4 = vunpack.i.h.bf16 %v4833_v58 }
  0x80   :  { %v4800_v35 = vunpack.i.h.bf16 %v4798_v33  ;;  %v4799_v36 = vunpack.i.l.bf16 %v4798_v33 }
  0x81   :  { %v52_v40 = vsel %vm46_vm0, %v4805_v21, %v4809_v32  ;;  %v53_v41 = vsel %vm46_vm0, %v4809_v32, %v4810_v34  ;;  %v4848_v21 = vpop.permute.xlu2 %4847 }
  0x82   :  { %v48_v37 = vsel %vm46_vm0, %v4795_v24, %v4799_v36  ;;  %v49_v38 = vsel %vm46_vm0, %v4799_v36, %v4800_v35  ;;  %v50_v39 = vsel %vm46_vm0, %v4800_v35, %v4804_v22  ;;  %v4849_v27 = vunpack.i.l.bf16 %v4848_v21 }
  0x83   :  { %100 = vmatpush.msra.mxu1 %v48_v37  ;;  %120 = vmatpush.msra.mxu2 %v49_v38  ;;  %vm2928_vm0 = vcmask 547840  }
  0x84   :  { %140 = vmatpush.msra.mxu3 %v50_v39  ;;  %4570 = vmatmul.msk.f32.vlgmr.msra.gmra.mxu1 %vm61_vm1, %v4568_v26 }
  0x85   :  { %4571 = vmatmul.msk.f32.vlgmr.msra.gmra.mxu2 %vm61_vm1, %v4568_v26  ;;  %4572 = vmatmul.msk.f32.vlgmr.msra.gmra.mxu3 %vm61_vm1, %v4568_v26 }
  0x86   :  { %4573 = vmatmul.msk.f32.vlgmr.msrb.gmra.mxu0 %vm61_vm1, %v4568_v26  ;;  %180 = vmatpush.msrb.mxu1 %v52_v40  ;;  %v4828_v52 = vpop.permute.xlu1 %4827  ;;  %v4591_v40 = vld [vmem:[%s6352_s0 + $0x18] sm:$0xff] }
  0x87   :  { %200 = vmatpush.msrb.mxu2 %v53_v41  ;;  %223 = vmatpush.msrb.mxu3 %v5326_v2  ;;  %v4823_v49 = vpop.permute.xlu0 %4822  ;;  %v4829_v56 = vunpack.i.l.bf16 %v4828_v52  ;;  %v4830_v59 = vunpack.i.h.bf16 %v4828_v52  ;;  %v550_v2 = vsel %vm549_vm3, %v4834_v7, %v4835_v4 }
  0x88   :  { %263 = vmatpush.msra.mxu1 %v5354_v8  ;;  %323 = vmatpush.msrb.mxu0 %v5321_v1  ;;  %v4824_v55 = vunpack.i.l.bf16 %v4823_v49  ;;  %v4825_v57 = vunpack.i.h.bf16 %v4823_v49 }
  0x89   :  { %283 = vmatpush.msra.mxu2 %v5359_v9  ;;  %303 = vmatpush.msra.mxu3 %v5316_v0  ;;  %v373_v0 = vsel %vm366_vm2, %v4829_v56, %v4830_v59  ;;  %v4863_v35 = vpop.permute.xlu2 %4862 }
  0x8a   :  { %v370_v60 = vsel %vm366_vm2, %v4820_v47, %v4824_v55  ;;  %v371_v61 = vsel %vm366_vm2, %v4824_v55, %v4825_v57  ;;  %v372_v62 = vsel %vm366_vm2, %v4825_v57, %v4829_v56  ;;  %5037 = vrot.lane.b32.xlu1 %v5402_v15, %s5286_s13  ;;  %5032 = vrot.lane.b32.xlu0 %v5337_v5, %s5286_s13  ;;  %v4864_v39 = vunpack.i.l.bf16 %v4863_v35  ;;  %v4599_v56 = vld [vmem:[%s6352_s0 + $0x20] sm:$0xff] }
  0x8b   :  { %v4865_v41 = vunpack.i.h.bf16 %v4863_v35  ;;  %5042 = vrot.lane.b32.xlu2 %v5406_v16, %s5286_s13  ;;  %vm3111_vm2 = vcmask 539648  }
  0x8c   :  { %4574 = vmatmul.msk.f32.vlgmr.msrb.gmra.mxu1 %vm61_vm1, %v4568_v26 }
  0x8d   :  { %4575 = vmatmul.msk.f32.vlgmr.msrb.gmra.mxu2 %vm61_vm1, %v4568_v26  ;;  %4576 = vmatmul.msk.f32.vlgmr.msrb.gmra.mxu3 %vm61_vm1, %v19_v48  ;;  %v4850_v26 = vunpack.i.h.bf16 %v4848_v21 }
  0x8e   :  { %4577 = vmatmul.msk.f32.vlgmr.msra.gmra.mxu0 %vm61_vm1, %v19_v48  ;;  %399 = vmatpush.msrb.mxu2 %v367_v50  ;;  %v4843_v1 = vpop.permute.xlu1 %4842 }
  0x8f   :  { %419 = vmatpush.msrb.mxu3 %v368_v51  ;;  %343 = vmatpush.msrb.mxu1 %v5343_v6  ;;  %v4838_v63 = vpop.permute.xlu0 %4837  ;;  %v4844_v17 = vunpack.i.l.bf16 %v4843_v1  ;;  %v4845_v25 = vunpack.i.h.bf16 %v4843_v1  ;;  %v556_v34 = vsel %vm549_vm3, %v4849_v27, %v4850_v26  ;;  %v4607_v26 = vld [vmem:[%s6352_s0 + $0x28] sm:$0xff] }
  0x90   :  { %439 = vmatpush.msra.mxu0 %v369_v53  ;;  %v4840_v8 = vunpack.i.h.bf16 %v4838_v63  ;;  %v4839_v12 = vunpack.i.l.bf16 %v4838_v63 }
  0x91   :  { %v554_v32 = vsel %vm549_vm3, %v4844_v17, %v4845_v25  ;;  %v555_v33 = vsel %vm549_vm3, %v4845_v25, %v4849_v27  ;;  %v4878_v49 = vpop.permute.xlu2 %4877 }
  0x92   :  { %v551_v9 = vsel %vm549_vm3, %v4835_v4, %v4839_v12  ;;  %v552_v22 = vsel %vm549_vm3, %v4839_v12, %v4840_v8  ;;  %v553_v23 = vsel %vm549_vm3, %v4840_v8, %v4844_v17  ;;  %5052 = vrot.lane.b32.xlu1 %v5363_v10, %s5286_s13  ;;  %5047 = vrot.lane.b32.xlu0 %v5337_v5, %s5287_s18  ;;  %v4879_v55 = vunpack.i.l.bf16 %v4878_v49 }
  0x93   :  { %v4880_v63 = vunpack.i.h.bf16 %v4878_v49  ;;  %5057 = vrot.lane.b32.xlu2 %v5418_v18, %s5287_s18  ;;  %vm3294_vm3 = vcmask 531456  }
  0x94   :  { %4578 = vmatmul.msk.f32.vlgmr.msra.gmra.mxu1 %vm61_vm1, %v19_v48 }
  0x95   :  { %4579 = vmatmul.msk.f32.vlgmr.msra.gmra.mxu2 %vm61_vm1, %v19_v48  ;;  %4580 = vmatmul.msk.f32.vlgmr.msra.gmra.mxu3 %vm61_vm1, %v19_v48  ;;  %v918_v8 = vsel %vm915_vm5, %v4879_v55, %v4880_v63 }
  0x96   :  { %4581 = vmatmul.msk.f32.vlgmr.msrb.gmra.mxu0 %vm61_vm1, %v19_v48  ;;  %459 = vmatpush.msra.mxu1 %v370_v60  ;;  %v4858_v30 = vpop.permute.xlu1 %4857 }
  0x97   :  { %479 = vmatpush.msra.mxu2 %v371_v61  ;;  %499 = vmatpush.msra.mxu3 %v372_v62  ;;  %v4853_v24 = vpop.permute.xlu0 %4852  ;;  %v4859_v37 = vunpack.i.l.bf16 %v4858_v30  ;;  %v4860_v38 = vunpack.i.h.bf16 %v4858_v30 }
  0x98   :  { %519 = vmatpush.msrb.mxu0 %v373_v0  ;;  %v4855_v28 = vunpack.i.h.bf16 %v4853_v24  ;;  %v4854_v29 = vunpack.i.l.bf16 %v4853_v24 }
  0x99   :  { %v735_v45 = vsel %vm732_vm4, %v4859_v37, %v4860_v38  ;;  %v736_v46 = vsel %vm732_vm4, %v4860_v38, %v4864_v39  ;;  %v4893_v4 = vpop.permute.xlu2 %4892 }
  0x9a   :  { %v733_v36 = vsel %vm732_vm4, %v4854_v29, %v4855_v28  ;;  %v734_v44 = vsel %vm732_vm4, %v4855_v28, %v4859_v37  ;;  %5062 = vrot.lane.b32.xlu0 %v5479_v54, %s5287_s18  ;;  %5067 = vrot.lane.b32.xlu1 %v5363_v10, %s5287_s18 }
  0x9b   :  { %5072 = vrot.lane.b32.xlu2 %v5424_v20, %s5288_s21 }
  0x9c   :  { %4582 = vmatmul.msk.f32.vlgmr.msrb.gmra.mxu1 %vm61_vm1, %v19_v48  ;;  %v737_v48 = vsel %vm732_vm4, %v4864_v39, %v4865_v41 }
  0x9d   :  { %4584 = vmatmul.msk.f32.vlgmr.msrb.gmra.mxu2 %vm61_vm1, %v4583_v19  ;;  %4585 = vmatmul.msk.f32.vlgmr.msrb.gmra.mxu3 %vm61_vm1, %v4583_v19 }
  0x9e   :  { %4586 = vmatmul.msk.f32.vlgmr.msra.gmra.mxu0 %vm61_vm1, %v4583_v19  ;;  %582 = vmatpush.msrb.mxu1 %v550_v2  ;;  %v4873_v47 = vpop.permute.xlu1 %4872 }
  0x9f   :  { %602 = vmatpush.msrb.mxu2 %v551_v9  ;;  %622 = vmatpush.msrb.mxu3 %v552_v22  ;;  %v4868_v42 = vpop.permute.xlu0 %4867  ;;  %v4875_v51 = vunpack.i.h.bf16 %v4873_v47  ;;  %v4874_v52 = vunpack.i.l.bf16 %v4873_v47  ;;  %v4895_v22 = vunpack.i.h.bf16 %v4893_v4 }
  0xa0   :  { %642 = vmatpush.msra.mxu0 %v553_v23  ;;  %v4869_v50 = vunpack.i.l.bf16 %v4868_v42  ;;  %v4870_v53 = vunpack.i.h.bf16 %v4868_v42  ;;  %v4894_v23 = vunpack.i.l.bf16 %v4893_v4 }
  0xa1   :  { %v916_v60 = vsel %vm915_vm5, %v4874_v52, %v4875_v51  ;;  %v917_v61 = vsel %vm915_vm5, %v4875_v51, %v4879_v55  ;;  %v4908_v27 = vpop.permute.xlu2 %4907 }
  0xa2   :  { %v738_v57 = vsel %vm732_vm4, %v4865_v41, %v4869_v50  ;;  %v739_v59 = vsel %vm732_vm4, %v4869_v50, %v4870_v53  ;;  %5077 = vrot.lane.b32.xlu0 %v5498_v3, %s5288_s21  ;;  %5082 = vrot.lane.b32.xlu1 %v5456_v43, %s5288_s21  ;;  %v1099_v29 = vsel %vm1098_vm6, %v4894_v23, %v4895_v22  ;;  %v4909_v35 = vunpack.i.l.bf16 %v4908_v27  ;;  %v4615_v50 = vld [vmem:[%s6352_s0 + $0x30] sm:$0xff] }
  0xa3   :  { %v4910_v37 = vunpack.i.h.bf16 %v4908_v27  ;;  %5087 = vrot.lane.b32.xlu2 %v5439_v31, %s5288_s21  ;;  %vm3477_vm4 = vcmask 523264  }
  0xa4   :  { %4587 = vmatmul.msk.f32.vlgmr.msra.gmra.mxu1 %vm61_vm1, %v4583_v19 }
  0xa5   :  { %4588 = vmatmul.msk.f32.vlgmr.msra.gmra.mxu2 %vm61_vm1, %v4583_v19  ;;  %4589 = vmatmul.msk.f32.vlgmr.msra.gmra.mxu3 %vm61_vm1, %v4583_v19  ;;  %v1105_v42 = vsel %vm1098_vm6, %v4909_v35, %v4910_v37 }
  0xa6   :  { %4590 = vmatmul.msk.f32.vlgmr.msrb.gmra.mxu0 %vm61_vm1, %v4583_v19  ;;  %662 = vmatpush.msra.mxu1 %v554_v32  ;;  %v4888_v62 = vpop.permute.xlu1 %4887 }
  0xa7   :  { %682 = vmatpush.msra.mxu2 %v555_v33  ;;  %702 = vmatpush.msra.mxu3 %v556_v34  ;;  %v4883_v58 = vpop.permute.xlu0 %4882  ;;  %v4889_v7 = vunpack.i.l.bf16 %v4888_v62  ;;  %v4890_v9 = vunpack.i.h.bf16 %v4888_v62 }
  0xa8   :  { %765 = vmatpush.msrb.mxu0 %v733_v36  ;;  %v4885_v0 = vunpack.i.h.bf16 %v4883_v58  ;;  %v4884_v1 = vunpack.i.l.bf16 %v4883_v58 }
  0xa9   :  { %v922_v28 = vsel %vm915_vm5, %v4889_v7, %v4890_v9  ;;  %v4923_v41 = vpop.permute.xlu2 %4922 }
  0xaa   :  { %v919_v12 = vsel %vm915_vm5, %v4880_v63, %v4884_v1  ;;  %v920_v17 = vsel %vm915_vm5, %v4884_v1, %v4885_v0  ;;  %v921_v19 = vsel %vm915_vm5, %v4885_v0, %v4889_v7  ;;  %5097 = vrot.lane.b32.xlu1 %v5337_v5, %s5289_s24  ;;  %5092 = vrot.lane.b32.xlu0 %v5367_v11, %s5289_s24  ;;  %v4924_v49 = vunpack.i.l.bf16 %v4923_v41 }
  0xab   :  { %5102 = vrot.lane.b32.xlu2 %v5392_v13, %s5289_s24  ;;  %vm3660_vm5 = vcmask 392192  }
  0xac   :  { %4592 = vmatmul.msk.f32.vlgmr.msrb.gmra.mxu1 %vm61_vm1, %v4591_v40 }
  0xad   :  { %4593 = vmatmul.msk.f32.vlgmr.msrb.gmra.mxu2 %vm61_vm1, %v4591_v40  ;;  %4594 = vmatmul.msk.f32.vlgmr.msrb.gmra.mxu3 %vm61_vm1, %v4591_v40 }
  0xae   :  { %4595 = vmatmul.msk.f32.vlgmr.msra.gmra.mxu0 %vm61_vm1, %v4591_v40  ;;  %785 = vmatpush.msrb.mxu1 %v734_v44  ;;  %v4903_v2 = vpop.permute.xlu1 %4902 }
  0xaf   :  { %805 = vmatpush.msrb.mxu2 %v735_v45  ;;  %825 = vmatpush.msrb.mxu3 %v736_v46  ;;  %v4898_v21 = vpop.permute.xlu0 %4897  ;;  %v4904_v33 = vunpack.i.l.bf16 %v4903_v2  ;;  %v4905_v34 = vunpack.i.h.bf16 %v4903_v2 }
  0xb0   :  { %845 = vmatpush.msra.mxu0 %v737_v48  ;;  %v4899_v24 = vunpack.i.l.bf16 %v4898_v21  ;;  %v4900_v25 = vunpack.i.h.bf16 %v4898_v21 }
  0xb1   :  { %v1103_v39 = vsel %vm1098_vm6, %v4904_v33, %v4905_v34 }
  0xb2   :  { %v1100_v30 = vsel %vm1098_vm6, %v4895_v22, %v4899_v24  ;;  %v1101_v43 = vsel %vm1098_vm6, %v4899_v24, %v4900_v25  ;;  %v1102_v38 = vsel %vm1098_vm6, %v4900_v25, %v4904_v33  ;;  %5107 = vrot.lane.b32.xlu0 %v5397_v14, %s5289_s24  ;;  %5112 = vrot.lane.b32.xlu1 %v5337_v5, %s5290_s27 }
  0xb3   :  { %5117 = vrot.lane.b32.xlu2 %v5402_v15, %s5290_s27 }
  0xb4   :  { %4596 = vmatmul.msk.f32.vlgmr.msra.gmra.mxu1 %vm61_vm1, %v4591_v40 }
  0xb5   :  { %4597 = vmatmul.msk.f32.vlgmr.msra.gmra.mxu2 %vm61_vm1, %v4591_v40  ;;  %4598 = vmatmul.msk.f32.vlgmr.msra.gmra.mxu3 %vm61_vm1, %v4591_v40  ;;  %v1104_v40 = vsel %vm1098_vm6, %v4905_v34, %v4909_v35  ;;  %vm3843_vm6 = vcmask 384000  }
  0xb6   :  { %4600 = vmatmul.msk.f32.vlgmr.msrb.gmra.mxu0 %vm61_vm1, %v4599_v56  ;;  %865 = vmatpush.msra.mxu1 %v738_v57  ;;  %v4918_v36 = vpop.permute.xlu1 %4917  ;;  %v4925_v57 = vunpack.i.h.bf16 %v4923_v41 }
  0xb7   :  { %885 = vmatpush.msra.mxu2 %v739_v59  ;;  %948 = vmatpush.msra.mxu3 %v916_v60  ;;  %v4913_v32 = vpop.permute.xlu0 %4912  ;;  %v4920_v46 = vunpack.i.h.bf16 %v4918_v36  ;;  %v4919_v47 = vunpack.i.l.bf16 %v4918_v36 }
  0xb8   :  { %968 = vmatpush.msrb.mxu0 %v917_v61  ;;  %v4915_v44 = vunpack.i.h.bf16 %v4913_v32  ;;  %v4914_v45 = vunpack.i.l.bf16 %v4913_v32  ;;  %v1286_v63 = vsel %vm1281_vm7, %v4924_v49, %v4925_v57 }
  0xb9   :  { %v1284_v55 = vsel %vm1281_vm7, %v4919_v47, %v4920_v46  ;;  %v1285_v14 = vsel %vm1281_vm7, %v4920_v46, %v4924_v49 }
  0xba   :  { %v1282_v52 = vsel %vm1281_vm7, %v4914_v45, %v4915_v44  ;;  %v1283_v53 = vsel %vm1281_vm7, %v4915_v44, %v4919_v47  ;;  %5122 = vrot.lane.b32.xlu0 %v5406_v16, %s5290_s27  ;;  %5127 = vrot.lane.b32.xlu1 %v5337_v5, %s5291_s28 }
  0xbb   :  { %5132 = vrot.lane.b32.xlu2 %v5363_v10, %s5290_s27 }
  0xbc   :  { %4601 = vmatmul.msk.f32.vlgmr.msrb.gmra.mxu1 %vm61_vm1, %v4599_v56 }
  0xbd   :  { %4602 = vmatmul.msk.f32.vlgmr.msrb.gmra.mxu2 %vm61_vm1, %v4599_v56  ;;  %4603 = vmatmul.msk.f32.vlgmr.msrb.gmra.mxu3 %vm61_vm1, %v4599_v56 }
  0xbe   :  { %4604 = vmatmul.msk.f32.vlgmr.msra.gmra.mxu0 %vm61_vm1, %v4599_v56  ;;  %988 = vmatpush.msrb.mxu1 %v918_v8  ;;  %v4933_v51 = vpop.permute.xlu1 %4932 }
  0xbf   :  { %1008 = vmatpush.msrb.mxu2 %v919_v12  ;;  %1028 = vmatpush.msrb.mxu3 %v920_v17  ;;  %v4928_v48 = vpop.permute.xlu0 %4927  ;;  %v4934_v60 = vunpack.i.l.bf16 %v4933_v51  ;;  %v4935_v16 = vunpack.i.h.bf16 %v4933_v51  ;;  %v4623_v17 = vld [vmem:[%s6352_s0 + $0x38] sm:$0xff] }
  0xc0   :  { %1048 = vmatpush.msra.mxu0 %v921_v19  ;;  %v4930_v58 = vunpack.i.h.bf16 %v4928_v48  ;;  %v4929_v59 = vunpack.i.l.bf16 %v4928_v48  ;;  %v4639_v48 = vld [vmem:[%s6352_s0 + $0x48] sm:$0xff] }
  0xc2   :  { %v1287_v0 = vsel %vm1281_vm7, %v4925_v57, %v4929_v59  ;;  %v1288_v1 = vsel %vm1281_vm7, %v4929_v59, %v4930_v58  ;;  %5137 = vrot.lane.b32.xlu0 %v5418_v18, %s5291_s28  ;;  %5142 = vrot.lane.b32.xlu1 %v5479_v54, %s5291_s28  ;;  %vm4026_vm7 = vcmask 375808  }
  0xc3   :  { %5147 = vrot.lane.b32.xlu2 %v5363_v10, %s5291_s28 }
  0xc4   :  { %4605 = vmatmul.msk.f32.vlgmr.msra.gmra.mxu1 %vm61_vm1, %v4599_v56 }
  0xc5   :  { %4606 = vmatmul.msk.f32.vlgmr.msra.gmra.mxu2 %vm61_vm1, %v4599_v56  ;;  %4608 = vmatmul.msk.f32.vlgmr.msra.gmra.mxu3 %vm61_vm1, %v4607_v26  ;;  %v4938_v56 = vpop.permute.xlu2 %4937 }
  0xc6   :  { %4609 = vmatmul.msk.f32.vlgmr.msrb.gmra.mxu0 %vm61_vm1, %v4607_v26  ;;  %1068 = vmatpush.msra.mxu1 %v922_v28  ;;  %v4940_v61 = vunpack.i.h.bf16 %v4938_v56  ;;  %v4948_v4 = vpop.permute.xlu1 %4947  ;;  %v4939_v8 = vunpack.i.l.bf16 %v4938_v56  ;;  %v4631_v28 = vld [vmem:[%s6352_s0 + $0x40] sm:$0xff] }
  0xc7   :  { %1131 = vmatpush.msra.mxu2 %v1099_v29  ;;  %1151 = vmatpush.msra.mxu3 %v1100_v30  ;;  %v4943_v62 = vpop.permute.xlu0 %4942  ;;  %v4950_v19 = vunpack.i.h.bf16 %v4948_v4  ;;  %v4949_v24 = vunpack.i.l.bf16 %v4948_v4  ;;  %v5721_v4 = vld [vmem:[%s6351_s1 + $0x38] sm:$0xff] }
  0xc8   :  { %1171 = vmatpush.msrb.mxu0 %v1101_v43  ;;  %v1465_v7 = vsel %vm1464_vm8, %v4934_v60, %v4940_v61  ;;  %v4944_v12 = vunpack.i.l.bf16 %v4943_v62  ;;  %v1466_v2 = vsel %vm1464_vm8, %v4940_v61, %v4935_v16  ;;  %v1467_v9 = vsel %vm1464_vm8, %v4935_v16, %v4939_v8 }
  0xc9   :  { %v4945_v18 = vunpack.i.h.bf16 %v4943_v62 }
  0xca   :  { %v1468_v5 = vsel %vm1464_vm8, %v4939_v8, %v4944_v12  ;;  %v1469_v23 = vsel %vm1464_vm8, %v4944_v12, %v4950_v19  ;;  %5152 = vrot.lane.b32.xlu0 %v5424_v20, %s5292_s5  ;;  %5157 = vrot.lane.b32.xlu1 %v5498_v3, %s5292_s5 }
  0xcb   :  { %v1470_v29 = vsel %vm1464_vm8, %v4950_v19, %v4945_v18  ;;  %v1471_v30 = vsel %vm1464_vm8, %v4945_v18, %v4949_v24  ;;  %vm4209_vm8 = vcmask 367616  }
  0xcc   :  { %4610 = vmatmul.msk.f32.vlgmr.msrb.gmra.mxu1 %vm61_vm1, %v4607_v26 }
  0xcd   :  { %4611 = vmatmul.msk.f32.vlgmr.msrb.gmra.mxu2 %vm61_vm1, %v4607_v26  ;;  %4612 = vmatmul.msk.f32.vlgmr.msrb.gmra.mxu3 %vm61_vm1, %v4607_v26  ;;  %v4953_v21 = vpop.permute.xlu2 %4952 }
  0xce   :  { %4613 = vmatmul.msk.f32.vlgmr.msra.gmra.mxu0 %vm61_vm1, %v4607_v26  ;;  %1191 = vmatpush.msrb.mxu1 %v1102_v38  ;;  %v4963_v13 = vpop.permute.xlu1 %4962  ;;  %v4955_v25 = vunpack.i.h.bf16 %v4953_v21 }
  0xcf   :  { %1211 = vmatpush.msrb.mxu2 %v1103_v39  ;;  %1231 = vmatpush.msrb.mxu3 %v1104_v40  ;;  %v4958_v22 = vpop.permute.xlu0 %4957  ;;  %v4964_v27 = vunpack.i.l.bf16 %v4963_v13  ;;  %v4965_v36 = vunpack.i.h.bf16 %v4963_v13 }
  0xd0   :  { %1251 = vmatpush.msra.mxu0 %v1105_v42  ;;  %v4959_v34 = vunpack.i.l.bf16 %v4958_v22  ;;  %v4960_v35 = vunpack.i.h.bf16 %v4958_v22  ;;  %v4647_v22 = vld [vmem:[%s6352_s0 + $0x50] sm:$0xff] }
  0xd1   :  { %v1649_v54 = vsel %vm1647_vm9, %v4955_v25, %v4964_v27 }
  0xd2   :  { %v1650_v39 = vsel %vm1647_vm9, %v4964_v27, %v4959_v34  ;;  %v1651_v40 = vsel %vm1647_vm9, %v4959_v34, %v4960_v35  ;;  %v1652_v41 = vsel %vm1647_vm9, %v4960_v35, %v4965_v36  ;;  %5167 = vrot.lane.b32.xlu0 %v5439_v31, %s5292_s5  ;;  %5172 = vrot.lane.b32.xlu1 %v5367_v11, %s5293_s10  ;;  %v5716_v11 = vld [vmem:[%s6351_s1 + $0x28] sm:$0xff] }
  0xd4   :  { %4614 = vmatmul.msk.f32.vlgmr.msra.gmra.mxu1 %vm61_vm1, %v4607_v26  ;;  %v4954_v26 = vunpack.i.l.bf16 %v4953_v21 }
  0xd5   :  { %4616 = vmatmul.msk.f32.vlgmr.msra.gmra.mxu2 %vm61_vm1, %v4615_v50  ;;  %4617 = vmatmul.msk.f32.vlgmr.msra.gmra.mxu3 %vm61_vm1, %v4615_v50  ;;  %v4968_v32 = vpop.permute.xlu2 %4967 }
  0xd6   :  { %4618 = vmatmul.msk.f32.vlgmr.msrb.gmra.mxu0 %vm61_vm1, %v4615_v50  ;;  %1314 = vmatpush.msra.mxu1 %v1282_v52  ;;  %v1648_v43 = vsel %vm1647_vm9, %v4954_v26, %v4955_v25  ;;  %v4978_v38 = vpop.permute.xlu1 %4977  ;;  %v4970_v3 = vunpack.i.h.bf16 %v4968_v32  ;;  %v4969_v42 = vunpack.i.l.bf16 %v4968_v32  ;;  %v5747_v26 = vld [vmem:[%s6351_s1 + $0x18] sm:$0xff] }
  0xd7   :  { %1334 = vmatpush.msra.mxu2 %v1283_v53  ;;  %1354 = vmatpush.msra.mxu3 %v1284_v55  ;;  %v4973_v33 = vpop.permute.xlu0 %4972  ;;  %v4979_v45 = vunpack.i.l.bf16 %v4978_v38  ;;  %v5691_v55 = vld [vmem:[%s6351_s1 + $0x20] sm:$0xff]  ;;  %v4980_v56 = vunpack.i.h.bf16 %v4978_v38 }
  0xd8   :  { %1374 = vmatpush.msrb.mxu0 %v1285_v14  ;;  %v4974_v37 = vunpack.i.l.bf16 %v4973_v33  ;;  %v4975_v44 = vunpack.i.h.bf16 %v4973_v33  ;;  %v5181_v14 = vpack.i.bf16 %v5343_v6, %v5691_v55  ;;  %v5196_v27 = vpack.i.bf16 %v5691_v55, %v5747_v26 }
  0xd9   :  { %v1832_v51 = vsel %vm1830_vm10, %v4970_v3, %v4979_v45 }
  0xda   :  { %v1653_v15 = vsel %vm1647_vm9, %v4965_v36, %v4974_v37  ;;  %v1654_v52 = vsel %vm1647_vm9, %v4974_v37, %v4975_v44  ;;  %5182 = vrot.lane.b32.xlu0 %v5181_v14, %s5293_s10  ;;  %vm4392_vm9 = vcmask 359424  }
  0xdc   :  { %4619 = vmatmul.msk.f32.vlgmr.msrb.gmra.mxu1 %vm61_vm1, %v4615_v50 }
  0xdd   :  { %4620 = vmatmul.msk.f32.vlgmr.msrb.gmra.mxu2 %vm61_vm1, %v4615_v50  ;;  %4621 = vmatmul.msk.f32.vlgmr.msrb.gmra.mxu3 %vm61_vm1, %v4615_v50  ;;  %v4983_v20 = vpop.permute.xlu2 %4982 }
  0xde   :  { %4622 = vmatmul.msk.f32.vlgmr.msra.gmra.mxu0 %vm61_vm1, %v4615_v50  ;;  %1394 = vmatpush.msrb.mxu1 %v1286_v63  ;;  %v4985_v47 = vunpack.i.h.bf16 %v4983_v20  ;;  %v1831_v50 = vsel %vm1830_vm10, %v4969_v42, %v4970_v3  ;;  %v4993_v53 = vpop.permute.xlu1 %4992  ;;  %v4984_v57 = vunpack.i.l.bf16 %v4983_v20 }
  0xdf   :  { %1414 = vmatpush.msrb.mxu2 %v1287_v0  ;;  %1434 = vmatpush.msrb.mxu3 %v1288_v1  ;;  %v4988_v49 = vpop.permute.xlu0 %4987  ;;  %v4994_v8 = vunpack.i.l.bf16 %v4993_v53  ;;  %v4995_v21 = vunpack.i.h.bf16 %v4993_v53 }
  0xe0   :  { %1497 = vmatpush.msra.mxu0 %v1465_v7  ;;  %v1833_v31 = vsel %vm1830_vm10, %v4979_v45, %v4985_v47  ;;  %v4989_v58 = vunpack.i.l.bf16 %v4988_v49  ;;  %v4990_v61 = vunpack.i.h.bf16 %v4988_v49  ;;  %v1834_v62 = vsel %vm1830_vm10, %v4985_v47, %v4980_v56  ;;  %v5807_v49 = vld [vmem:[%s6351_s1 + $0x8] sm:$0xff] }
  0xe1   :  { %v1835_v63 = vsel %vm1830_vm10, %v4980_v56, %v4984_v57  ;;  %v5186_v7 = vpack.i.bf16 %v5716_v11, %v5721_v4  ;;  %v2015_v24 = vsel %vm2013_vm11, %v4994_v8, %v4995_v21 }
  0xe2   :  { %v1836_v0 = vsel %vm1830_vm10, %v4984_v57, %v4989_v58  ;;  %v1837_v10 = vsel %vm1830_vm10, %v4989_v58, %v4990_v61  ;;  %5197 = vrot.lane.b32.xlu0 %v5196_v27, %s5294_s23  ;;  %v4655_v61 = vld [vmem:[%s6352_s0 + $0x58] sm:$0xff]  ;;  %v5860_v27 = vld [vmem:[%s6352_s0 + $0x60] sm:$0xff] }
  0xe3   :  { %5187 = vrot.lane.b32.xlu1 %v5186_v7, %s5293_s10 }
  0xe4   :  { %4624 = vmatmul.msk.f32.vlgmr.msra.gmra.mxu1 %vm61_vm1, %v4623_v17 }
  0xe5   :  { %4625 = vmatmul.msk.f32.vlgmr.msra.gmra.mxu2 %vm61_vm1, %v4623_v17  ;;  %4626 = vmatmul.msk.f32.vlgmr.msra.gmra.mxu3 %vm61_vm1, %v4623_v17  ;;  %v4998_v59 = vpop.permute.xlu2 %4997 }
  0xe6   :  { %4627 = vmatmul.msk.f32.vlgmr.msrb.gmra.mxu0 %vm61_vm1, %v4623_v17  ;;  %1517 = vmatpush.msra.mxu1 %v1466_v2  ;;  %v5008_v16 = vpop.permute.xlu1 %5007  ;;  %v4999_v12 = vunpack.i.l.bf16 %v4998_v59  ;;  %v5000_v2 = vunpack.i.h.bf16 %v4998_v59 }
  0xe7   :  { %1537 = vmatpush.msra.mxu2 %v1467_v9  ;;  %1557 = vmatpush.msra.mxu3 %v1468_v5  ;;  %v5708_v1 = vpop.permute.xlu0 %5002  ;;  %v5009_v5 = vunpack.i.l.bf16 %v5008_v16  ;;  %v5010_v36 = vunpack.i.h.bf16 %v5008_v16 }
  0xe8   :  { %1577 = vmatpush.msrb.mxu0 %v1469_v23  ;;  %v2014_v18 = vsel %vm2013_vm11, %v4999_v12, %v4994_v8  ;;  %v2016_v25 = vsel %vm2013_vm11, %v4995_v21, %v5000_v2  ;;  %v5004_v33 = vunpack.i.l.bf16 %v5708_v1  ;;  %v5005_v37 = vunpack.i.h.bf16 %v5708_v1 }
  0xea   :  { %v2018_v3 = vsel %vm2013_vm11, %v5009_v5, %v5004_v33  ;;  %v2019_v42 = vsel %vm2013_vm11, %v5004_v33, %v5005_v37  ;;  %v2020_v44 = vsel %vm2013_vm11, %v5005_v37, %v5010_v36 }
  0xec   :  { %4628 = vmatmul.msk.f32.vlgmr.msrb.gmra.mxu1 %vm61_vm1, %v4623_v17 }
  0xed   :  { %4629 = vmatmul.msk.f32.vlgmr.msrb.gmra.mxu2 %vm61_vm1, %v4623_v17  ;;  %4630 = vmatmul.msk.f32.vlgmr.msrb.gmra.mxu3 %vm61_vm1, %v4623_v17  ;;  %v5736_v23 = vpop.permute.xlu2 %5012 }
  0xee   :  { %4632 = vmatmul.msk.f32.vlgmr.msra.gmra.mxu0 %vm61_vm1, %v4631_v28  ;;  %1597 = vmatpush.msrb.mxu1 %v1470_v29  ;;  %v5757_v29 = vld [vmem:[%s6351_s1 + $0x10] sm:$0xff]  ;;  %v5015_v14 = vunpack.i.h.bf16 %v5736_v23 }
  0xef   :  { %1617 = vmatpush.msrb.mxu2 %v1471_v30  ;;  %1680 = vmatpush.msrb.mxu3 %v1648_v43  ;;  %v5201_v30 = vpack.i.bf16 %v5716_v11, %v5757_v29  ;;  %v5764_v43 = vld [vmem:[%s6351_s1 + $0x30] sm:$0xff]  ;;  %v5231_v37 = vpack.i.bf16 %v5757_v29, %v5807_v49 }
  0xf0   :  { %1700 = vmatpush.msra.mxu0 %v1649_v54  ;;  %v5768_v32 = vpack.i.bf16 %v5764_v43, %v5716_v11  ;;  %v5018_v54 = vpop.permute.xlu0 %5017 }
  0xf1   :  { %5202 = vrot.lane.b32.xlu1 %v5201_v30, %s5294_s23 }
  0xf2   :  { %5162 = vrot.lane.b32.xlu2 %v5768_v32, %s5292_s5 }
  0xf4   :  { %4633 = vmatmul.msk.f32.vlgmr.msra.gmra.mxu1 %vm61_vm1, %v4631_v28 }
  0xf5   :  { %4634 = vmatmul.msk.f32.vlgmr.msra.gmra.mxu2 %vm61_vm1, %v4631_v28  ;;  %4635 = vmatmul.msk.f32.vlgmr.msra.gmra.mxu3 %vm61_vm1, %v4631_v28  ;;  %v5792_v45 = vpop.permute.xlu2 %5027 }
  0xf6   :  { %4636 = vmatmul.msk.f32.vlgmr.msrb.gmra.mxu0 %vm61_vm1, %v4631_v28  ;;  %1720 = vmatpush.msra.mxu1 %v1650_v39 }
  0xf7   :  { %1740 = vmatpush.msra.mxu2 %v1651_v40  ;;  %1760 = vmatpush.msra.mxu3 %v1652_v41  ;;  %v5020_v40 = vunpack.i.h.bf16 %v5018_v54  ;;  %v5019_v41 = vunpack.i.l.bf16 %v5018_v54 }
  0xf8   :  { %1780 = vmatpush.msrb.mxu0 %v1653_v15  ;;  %v5781_v15 = vpop.permute.xlu1 %5022 }
  0xf9   :  { %v5673_v46 = vpop.f32.mrf.mxu0  ;;  %v2197_v47 = vsel %vm2196_vm12, %v5019_v41, %v5020_v40  ;;  %v5024_v56 = vunpack.i.l.bf16 %v5781_v15 }
  0xfb   :  { %v2200_v7 = vsel %vm2196_vm12, %v5015_v14, %v5024_v56 }
  0xfc   :  { %4637 = vmatmul.msk.f32.vlgmr.msrb.gmra.mxu1 %vm61_vm1, %v4631_v28 }
  0xfd   :  { %4638 = vmatmul.msk.f32.vlgmr.msrb.gmra.mxu2 %vm61_vm1, %v4631_v28  ;;  %4640 = vmatmul.msk.f32.vlgmr.msrb.gmra.mxu3 %vm61_vm1, %v4639_v48  ;;  %v2017_v28 = vsel %vm2013_vm11, %v5000_v2, %v5009_v5  ;;  %v5043_v8 = vpop.permute.xlu2 %5042  ;;  %v5029_v5 = vunpack.i.l.bf16 %v5792_v45 }
  0xfe   :  { %4641 = vmatmul.msk.f32.vlgmr.msra.gmra.mxu0 %vm61_vm1, %v4639_v48  ;;  %1863 = vmatpush.msrb.mxu2 %v1831_v50 }
  0xff   :  { %1883 = vmatpush.msrb.mxu3 %v1832_v51  ;;  %1800 = vmatpush.msrb.mxu1 %v1654_v52  ;;  %v5014_v51 = vunpack.i.l.bf16 %v5736_v23  ;;  %v5216_v52 = vpack.i.bf16 %v5691_v55, %v5757_v29 }
 0x100   :  { %1903 = vmatpush.msra.mxu0 %v1833_v31 }
 0x101   :  { %v5697_v60 = vpop.f32.mrf.mxu1  ;;  %5217 = vrot.lane.b32.xlu1 %v5216_v52, %s5295_s29  ;;  %v2198_v1 = vsel %vm2196_vm12, %v5020_v40, %v5014_v51 }
 0x103   :  { %v5702_v6 = vpop.f32.mrf.mxu0 }
 0x104   :  { %4642 = vmatmul.msk.f32.vlgmr.msra.gmra.mxu1 %vm61_vm1, %v4639_v48 }
 0x105   :  { %4643 = vmatmul.msk.f32.vlgmr.msra.gmra.mxu2 %vm61_vm1, %v4639_v48  ;;  %4644 = vmatmul.msk.f32.vlgmr.msra.gmra.mxu3 %vm61_vm1, %v4639_v48 }
 0x106   :  { %4645 = vmatmul.msk.f32.vlgmr.msrb.gmra.mxu0 %vm61_vm1, %v4639_v48  ;;  %1923 = vmatpush.msra.mxu1 %v1834_v62  ;;  %v5030_v62 = vunpack.i.h.bf16 %v5792_v45 }
 0x107   :  { %1943 = vmatpush.msra.mxu2 %v1835_v63  ;;  %1963 = vmatpush.msra.mxu3 %v1836_v0  ;;  %v5033_v63 = vpop.permute.xlu0 %5032 }
 0x108   :  { %v5726_v17 = vpop.f32.mrf.mxu2  ;;  %v5728_v19 = vpop.f32.mrf.mxu3  ;;  %1983 = vmatpush.msrb.mxu0 %v1837_v10  ;;  %v2199_v10 = vsel %vm2196_vm12, %v5014_v51, %v5015_v14  ;;  %v2201_v16 = vsel %vm2196_vm12, %v5024_v56, %v5030_v62  ;;  %v5034_v23 = vunpack.i.l.bf16 %v5033_v63  ;;  %v5246_v14 = vpack.i.bf16 %v5721_v4, %v5691_v55 }
 0x109   :  { %v5731_v9 = vpop.f32.mrf.mxu1  ;;  %5232 = vrot.lane.b32.xlu1 %v5231_v37, %s5296_s4 }
 0x10b   :  { %v5738_v13 = vpop.f32.mrf.mxu0 }
 0x10c   :  { %4646 = vmatmul.msk.f32.vlgmr.msrb.gmra.mxu1 %vm61_vm1, %v4639_v48  ;;  %v5802_v48 = vld [vmem:[%s6351_s1] sm:$0xff]  ;;  %v246_v12 = vadd.f32 %v5738_v13, %v5697_v60  ;;  %v5044_v60 = vunpack.i.l.bf16 %v5043_v8 }
 0x10d   :  { %4648 = vmatmul.msk.f32.vlgmr.msrb.gmra.mxu2 %vm61_vm1, %v4647_v22  ;;  %4649 = vmatmul.msk.f32.vlgmr.msrb.gmra.mxu3 %vm61_vm1, %v4647_v22  ;;  %v5811_v50 = vpack.i.bf16 %v5807_v49, %v5802_v48 }
 0x10e   :  { %4650 = vmatmul.msk.f32.vlgmr.msra.gmra.mxu0 %vm61_vm1, %v4647_v22  ;;  %2046 = vmatpush.msrb.mxu1 %v2014_v18 }
 0x10f   :  { %2066 = vmatpush.msrb.mxu2 %v2015_v24  ;;  %2086 = vmatpush.msrb.mxu3 %v2016_v25  ;;  %v5866_v33 = vpop.permute.xlu0 %5047 }
 0x110   :  { %v5772_v34 = vpop.f32.mrf.mxu2  ;;  %v225_v35 = vpop.f32.mrf.mxu3  ;;  %2106 = vmatpush.msra.mxu0 %v2017_v28  ;;  %5177 = vrot.lane.b32.xlu2 %v5811_v50, %s5293_s10  ;;  %v5050_v56 = vunpack.i.h.bf16 %v5866_v33 }
 0x111   :  { %v5777_v38 = vadd.f32 %v225_v35, %v5673_v46  ;;  %v5779_v39 = vpop.f32.mrf.mxu1  ;;  %v5211_v46 = vpack.i.bf16 %v5721_v4, %v5764_v43  ;;  %5247 = vrot.lane.b32.xlu1 %v5246_v14, %s5296_s4 }
 0x112   :  { %v266_v51 = vadd.f32 %v5779_v39, %v5726_v17 }
 0x113   :  { %v5786_v20 = vpop.f32.mrf.mxu0  ;;  %5212 = vrot.lane.b32.xlu0 %v5211_v46, %s5294_s23 }
 0x114   :  { %4651 = vmatmul.msk.f32.vlgmr.msra.gmra.mxu1 %vm61_vm1, %v4647_v22 }
 0x115   :  { %4652 = vmatmul.msk.f32.vlgmr.msra.gmra.mxu2 %vm61_vm1, %v4647_v22  ;;  %4653 = vmatmul.msk.f32.vlgmr.msra.gmra.mxu3 %vm61_vm1, %v4647_v22 }
 0x116   :  { %4654 = vmatmul.msk.f32.vlgmr.msrb.gmra.mxu0 %vm61_vm1, %v4647_v22  ;;  %2126 = vmatpush.msra.mxu1 %v2018_v3  ;;  %v5035_v22 = vunpack.i.h.bf16 %v5033_v63 }
 0x117   :  { %2146 = vmatpush.msra.mxu2 %v2019_v42  ;;  %2166 = vmatpush.msra.mxu3 %v2020_v44  ;;  %v5045_v42 = vunpack.i.h.bf16 %v5043_v8  ;;  %v5063_v17 = vpop.permute.xlu0 %5062 }
 0x118   :  { %v285_v53 = vpop.f32.mrf.mxu2  ;;  %v305_v31 = vpop.f32.mrf.mxu3  ;;  %2229 = vmatpush.msrb.mxu0 %v2197_v47  ;;  %v2380_v54 = vsel %vm2379_vm13, %v5034_v23, %v5035_v22  ;;  %v2381_v35 = vsel %vm2379_vm13, %v5035_v22, %v5044_v60  ;;  %5192 = vrot.lane.b32.xlu2 %v5811_v50, %s5294_s23 }
 0x119   :  { %v5821_v57 = vadd.f32 %v285_v53, %v5728_v19  ;;  %v306_v58 = vadd.f32 %v305_v31, %v5702_v6  ;;  %v5824_v59 = vpop.f32.mrf.mxu1  ;;  %v5836_v6 = vpop.permute.xlu1 %5037  ;;  %v5025_v19 = vunpack.i.h.bf16 %v5781_v15 }
 0x11a   :  { %v5039_v40 = vunpack.i.l.bf16 %v5836_v6  ;;  %v5040_v3 = vunpack.i.h.bf16 %v5836_v6 }
 0x11b   :  { %v5833_v0 = vpop.f32.mrf.mxu0  ;;  %5227 = vrot.lane.b32.xlu0 %v5211_v46, %s5295_s29  ;;  %v2202_v28 = vsel %vm2196_vm12, %v5030_v62, %v5025_v19  ;;  %v2203_v30 = vsel %vm2196_vm12, %v5025_v19, %v5029_v5 }
 0x11c   :  { %4656 = vmatmul.msk.f32.vlgmr.msrb.gmra.mxu1 %vm61_vm1, %v4655_v61  ;;  %v2382_v49 = vsel %vm2379_vm13, %v5044_v60, %v5039_v40  ;;  %v2383_v52 = vsel %vm2379_vm13, %v5039_v40, %v5040_v3  ;;  %v2384_v53 = vsel %vm2379_vm13, %v5040_v3, %v5045_v42  ;;  %v526_v39 = vadd.f32 %v5833_v0, %v266_v51 }
 0x11d   :  { %4657 = vmatmul.msk.f32.vlgmr.msrb.gmra.mxu2 %vm61_vm1, %v4655_v61  ;;  %4658 = vmatmul.msk.f32.vlgmr.msrb.gmra.mxu3 %vm61_vm1, %v4655_v61  ;;  %v5261_v60 = vpack.i.bf16 %v5764_v43, %v5691_v55  ;;  %v5236_v3 = vpack.i.bf16 %v5747_v26, %v5802_v48 }
 0x11e   :  { %4659 = vmatmul.msk.f32.vlgmr.msra.gmra.mxu0 %vm61_vm1, %v4655_v61  ;;  %2249 = vmatpush.msrb.mxu1 %v2198_v1 }
 0x11f   :  { %2269 = vmatpush.msrb.mxu2 %v2199_v10  ;;  %2289 = vmatpush.msrb.mxu3 %v2200_v7  ;;  %v5065_v7 = vunpack.i.h.bf16 %v5063_v17 }
 0x120   :  { %v401_v21 = vpop.f32.mrf.mxu2  ;;  %v421_v2 = vpop.f32.mrf.mxu3  ;;  %2309 = vmatpush.msra.mxu0 %v2201_v16  ;;  %5207 = vrot.lane.b32.xlu2 %v5811_v50, %s5295_s29  ;;  %v5924_v16 = vld [vmem:[%s6352_s0 + $0x68] sm:$0xff] }
 0x121   :  { %v5851_v18 = vadd.f32 %v401_v21, %v5777_v38  ;;  %v525_v24 = vadd.f32 %v421_v2, %v246_v12  ;;  %v5853_v25 = vpop.f32.mrf.mxu1  ;;  %v5053_v36 = vpop.permute.xlu1 %5052  ;;  %v326_v38 = vadd.f32 %v5786_v20, %v5731_v9  ;;  %v346_v21 = vadd.f32 %v5824_v59, %v5772_v34  ;;  %5262 = vrot.lane.b32.xlu1 %v5261_v60, %s5297_s7 }
 0x122   :  { %v5054_v44 = vunpack.i.l.bf16 %v5053_v36  ;;  %v5886_v9 = vpop.permute.xlu2 %5057  ;;  %v5055_v63 = vunpack.i.h.bf16 %v5053_v36  ;;  %v5221_v34 = vpack.i.bf16 %v5747_v26, %v5716_v11 }
 0x123   :  { %v5855_v13 = vpop.f32.mrf.mxu0  ;;  %v5059_v1 = vunpack.i.l.bf16 %v5886_v9  ;;  %5242 = vrot.lane.b32.xlu0 %v5768_v32, %s5296_s4  ;;  %v5060_v23 = vunpack.i.h.bf16 %v5886_v9 }
 0x124   :  { %4660 = vmatmul.msk.f32.vlgmr.msra.gmra.mxu1 %vm61_vm1, %v4655_v61  ;;  %v2385_v31 = vsel %vm2379_vm13, %v5045_v42, %v5054_v44  ;;  %v2386_v32 = vsel %vm2379_vm13, %v5054_v44, %v5055_v63  ;;  %v530_v59 = vadd.f32 %v5855_v13, %v346_v21 }
 0x125   :  { %4661 = vmatmul.msk.f32.vlgmr.msra.gmra.mxu2 %vm61_vm1, %v4655_v61  ;;  %4662 = vmatmul.msk.f32.vlgmr.msra.gmra.mxu3 %vm61_vm1, %v4655_v61  ;;  %v2564_v2 = vsel %vm2562_vm14, %v5050_v56, %v5059_v1  ;;  %v2565_v22 = vsel %vm2562_vm14, %v5059_v1, %v5065_v7  ;;  %v2566_v43 = vsel %vm2562_vm14, %v5065_v7, %v5060_v23 }
 0x126   :  { %4664 = vmatmul.msk.f32.vlgmr.msrb.gmra.mxu0 %vm61_vm1, %v5860_v27  ;;  %2329 = vmatpush.msra.mxu1 %v2202_v28 }
 0x127   :  { %2349 = vmatpush.msra.mxu2 %v2203_v30  ;;  %2412 = vmatpush.msra.mxu3 %v2380_v54  ;;  %v5064_v30 = vunpack.i.l.bf16 %v5063_v17 }
 0x128   :  { %v481_v41 = vpop.f32.mrf.mxu2  ;;  %v501_v15 = vpop.f32.mrf.mxu3  ;;  %2432 = vmatpush.msrb.mxu0 %v2381_v35  ;;  %5222 = vrot.lane.b32.xlu2 %v5221_v34, %s5295_s29 }
 0x129   :  { %v5880_v45 = vadd.f32 %v481_v41, %v306_v58  ;;  %v529_v46 = vadd.f32 %v501_v15, %v326_v38  ;;  %v5882_v47 = vpop.f32.mrf.mxu1  ;;  %v5049_v58 = vunpack.i.l.bf16 %v5866_v33  ;;  %v5068_v8 = vpop.permute.xlu1 %5067  ;;  %v2567_v13 = vsel %vm2562_vm14, %v5060_v23, %v5064_v30 }
 0x12a   :  { %v5935_v5 = vpop.permute.xlu2 %5072  ;;  %v5069_v54 = vunpack.i.l.bf16 %v5068_v8  ;;  %v5070_v37 = vunpack.i.h.bf16 %v5068_v8  ;;  %v527_v41 = vadd.f32 %v5853_v25, %v5821_v57 }
 0x12b   :  { %v5888_v20 = vpop.f32.mrf.mxu0  ;;  %v2563_v19 = vsel %vm2562_vm14, %v5049_v58, %v5050_v56  ;;  %5257 = vrot.lane.b32.xlu0 %v5811_v50, %s5297_s7  ;;  %v5074_v57 = vunpack.i.l.bf16 %v5935_v5  ;;  %v5075_v9 = vunpack.i.h.bf16 %v5935_v5 }
 0x12c   :  { %4665 = vmatmul.msk.f32.vlgmr.msrb.gmra.mxu1 %vm61_vm1, %v5860_v27  ;;  %v2568_v38 = vsel %vm2562_vm14, %v5064_v30, %v5069_v54  ;;  %v2569_v50 = vsel %vm2562_vm14, %v5069_v54, %v5070_v37  ;;  %v710_v42 = vadd.f32 %v5888_v20, %v527_v41  ;;  %v4679_v20 = vld [vmem:[%s6352_s0 + $0x70] sm:$0xff] }
 0x12d   :  { %4666 = vmatmul.msk.f32.vlgmr.msrb.gmra.mxu2 %vm61_vm1, %v5860_v27  ;;  %4667 = vmatmul.msk.f32.vlgmr.msrb.gmra.mxu3 %vm61_vm1, %v5860_v27 }
 0x12e   :  { %4668 = vmatmul.msk.f32.vlgmr.msra.gmra.mxu0 %vm61_vm1, %v5860_v27  ;;  %2452 = vmatpush.msrb.mxu1 %v2382_v49 }
 0x12f   :  { %2472 = vmatpush.msrb.mxu2 %v2383_v52  ;;  %2492 = vmatpush.msrb.mxu3 %v2384_v53 }
 0x130   :  { %v604_v61 = vpop.f32.mrf.mxu2  ;;  %v624_v62 = vpop.f32.mrf.mxu3  ;;  %2512 = vmatpush.msra.mxu0 %v2385_v31  ;;  %5237 = vrot.lane.b32.xlu2 %v5236_v3, %s5296_s4 }
 0x131   :  { %v5911_v6 = vadd.f32 %v604_v61, %v525_v24  ;;  %v5913_v10 = vadd.f32 %v624_v62, %v526_v39  ;;  %v5915_v0 = vpop.f32.mrf.mxu1  ;;  %v5078_v24 = vpop.permute.xlu0 %5077  ;;  %v2747_v39 = vsel %vm2745_vm15, %v5074_v57, %v5075_v9 }
 0x132   :  { %v5083_v40 = vpop.permute.xlu1 %5082  ;;  %v5088_v15 = vpop.permute.xlu2 %5087  ;;  %v5079_v25 = vunpack.i.l.bf16 %v5078_v24  ;;  %v5080_v49 = vunpack.i.h.bf16 %v5078_v24 }
 0x133   :  { %v5926_v12 = vpop.f32.mrf.mxu0  ;;  %v5089_v48 = vunpack.i.l.bf16 %v5088_v15  ;;  %4386 = vrot.lane.b32.xlu0 %v5716_v11, %s5297_s7  ;;  %v707_v11 = vadd.f32 %v5882_v47, %v5851_v18  ;;  %v5084_v63 = vunpack.i.l.bf16 %v5083_v40  ;;  %v5090_v7 = vunpack.i.h.bf16 %v5088_v15 }
 0x134   :  { %4669 = vmatmul.msk.f32.vlgmr.msra.gmra.mxu1 %vm61_vm1, %v5860_v27  ;;  %v2746_v17 = vsel %vm2745_vm15, %v5079_v25, %v5074_v57  ;;  %v2748_v56 = vsel %vm2745_vm15, %v5075_v9, %v5080_v49 }
 0x135   :  { %4670 = vmatmul.msk.f32.vlgmr.msra.gmra.mxu2 %vm61_vm1, %v5860_v27  ;;  %4672 = vmatmul.msk.f32.vlgmr.msra.gmra.mxu3 %vm61_vm1, %v5924_v16  ;;  %v2749_v58 = vsel %vm2745_vm15, %v5080_v49, %v5089_v48  ;;  %v890_v62 = vadd.f32 %v5926_v12, %v707_v11  ;;  %v2750_v12 = vsel %vm2745_vm15, %v5089_v48, %v5084_v63 }
 0x136   :  { %4673 = vmatmul.msk.f32.vlgmr.msrb.gmra.mxu0 %vm61_vm1, %v5924_v16  ;;  %2595 = vmatpush.msra.mxu2 %v2563_v19 }
 0x137   :  { %2615 = vmatpush.msra.mxu3 %v2564_v2  ;;  %2532 = vmatpush.msra.mxu1 %v2386_v32 }
 0x138   :  { %v684_v27 = vpop.f32.mrf.mxu2  ;;  %v704_v28 = vpop.f32.mrf.mxu3  ;;  %2635 = vmatpush.msrb.mxu0 %v2565_v22 }
 0x139   :  { %v5950_v33 = vadd.f32 %v684_v27, %v529_v46  ;;  %v713_v35 = vadd.f32 %v704_v28, %v530_v59  ;;  %v5952_v36 = vpop.f32.mrf.mxu1  ;;  %v5990_v31 = vpop.permute.xlu0 %5092  ;;  %v711_v59 = vadd.f32 %v5915_v0, %v5880_v45  ;;  %v5251_v27 = vpack.i.bf16 %v5747_v26, %v5757_v29 }
 0x13a   :  { %v5098_v61 = vpop.permute.xlu1 %5097  ;;  %v6010_v2 = vpop.permute.xlu2 %5102  ;;  %v5094_v60 = vunpack.i.l.bf16 %v5990_v31  ;;  %v5095_v0 = vunpack.i.h.bf16 %v5990_v31  ;;  %v6063_v31 = vld [vmem:[%s6352_s0 + $0x80] sm:$0xff] }
 0x13b   :  { %v5958_v55 = vpop.f32.mrf.mxu0  ;;  %v5100_v19 = vunpack.i.h.bf16 %v5098_v61  ;;  %v5099_v21 = vunpack.i.l.bf16 %v5098_v61  ;;  %v5104_v30 = vunpack.i.l.bf16 %v6010_v2  ;;  %5252 = vrot.lane.b32.xlu2 %v5251_v27, %s5297_s7  ;;  %v5105_v57 = vunpack.i.h.bf16 %v6010_v2 }
 0x13c   :  { %4674 = vmatmul.msk.f32.vlgmr.msrb.gmra.mxu1 %vm61_vm1, %v5924_v16  ;;  %v894_v24 = vadd.f32 %v5958_v55, %v711_v59  ;;  %v4687_v55 = vld [vmem:[%s6352_s0 + $0x78] sm:$0xff] }
 0x13d   :  { %4675 = vmatmul.msk.f32.vlgmr.msrb.gmra.mxu2 %vm61_vm1, %v5924_v16  ;;  %4676 = vmatmul.msk.f32.vlgmr.msrb.gmra.mxu3 %vm61_vm1, %v5924_v16  ;;  %v2929_v23 = vsel %vm2928_vm0, %v5099_v21, %v5100_v19 }
 0x13e   :  { %4677 = vmatmul.msk.f32.vlgmr.msra.gmra.mxu0 %vm61_vm1, %v5924_v16  ;;  %2655 = vmatpush.msrb.mxu1 %v2566_v43 }
 0x13f   :  { %2675 = vmatpush.msrb.mxu2 %v2567_v13  ;;  %2695 = vmatpush.msrb.mxu3 %v2568_v38  ;;  %v2930_v13 = vsel %vm2928_vm0, %v5100_v19, %v5094_v60  ;;  %v2931_v38 = vsel %vm2928_vm0, %v5094_v60, %v5095_v0 }
 0x140   :  { %v807_v44 = vpop.f32.mrf.mxu2  ;;  %v827_v46 = vpop.f32.mrf.mxu3  ;;  %2715 = vmatpush.msra.mxu0 %v2569_v50  ;;  %v891_v50 = vadd.f32 %v5952_v36, %v5911_v6 }
 0x141   :  { %v5980_v51 = vadd.f32 %v807_v44, %v5913_v10  ;;  %v893_v52 = vadd.f32 %v827_v46, %v710_v42  ;;  %v5982_v53 = vpop.f32.mrf.mxu1  ;;  %v5108_v34 = vpop.permute.xlu0 %5107 }
 0x142   :  { %v5110_v43 = vunpack.i.h.bf16 %v5108_v34  ;;  %v5113_v26 = vpop.permute.xlu1 %5112  ;;  %v5118_v41 = vpop.permute.xlu2 %5117  ;;  %v5109_v46 = vunpack.i.l.bf16 %v5108_v34  ;;  %v895_v11 = vadd.f32 %v5982_v53, %v5950_v33 }
 0x143   :  { %v5992_v14 = vpop.f32.mrf.mxu0  ;;  %v5115_v6 = vunpack.i.h.bf16 %v5113_v26  ;;  %v5114_v36 = vunpack.i.l.bf16 %v5113_v26  ;;  %4390 = vrot.lane.b32.xlu2 %v5721_v4, %s5297_s7 }
 0x144   :  { %4678 = vmatmul.msk.f32.vlgmr.msra.gmra.mxu1 %vm61_vm1, %v5924_v16  ;;  %v5085_v16 = vunpack.i.h.bf16 %v5083_v40  ;;  %v2932_v40 = vsel %vm2928_vm0, %v5095_v0, %v5104_v30  ;;  %v2933_v15 = vsel %vm2928_vm0, %v5104_v30, %v5110_v43  ;;  %v1074_v42 = vadd.f32 %v5992_v14, %v891_v50 }
 0x145   :  { %4680 = vmatmul.msk.f32.vlgmr.msra.gmra.mxu2 %vm61_vm1, %v4679_v20  ;;  %4681 = vmatmul.msk.f32.vlgmr.msra.gmra.mxu3 %vm61_vm1, %v4679_v20  ;;  %v2934_v14 = vsel %vm2928_vm0, %v5110_v43, %v5105_v57 }
 0x146   :  { %4682 = vmatmul.msk.f32.vlgmr.msrb.gmra.mxu0 %vm61_vm1, %v4679_v20  ;;  %2778 = vmatpush.msra.mxu1 %v2746_v17  ;;  %v2751_v5 = vsel %vm2745_vm15, %v5084_v63, %v5085_v16  ;;  %v2752_v22 = vsel %vm2745_vm15, %v5085_v16, %v5090_v7  ;;  %v2935_v17 = vsel %vm2928_vm0, %v5105_v57, %v5109_v46 }
 0x147   :  { %2798 = vmatpush.msra.mxu2 %v2747_v39  ;;  %2818 = vmatpush.msra.mxu3 %v2748_v56  ;;  %v3112_v39 = vsel %vm3111_vm2, %v5114_v36, %v5115_v6 }
 0x148   :  { %v887_v1 = vpop.f32.mrf.mxu2  ;;  %v950_v10 = vpop.f32.mrf.mxu3  ;;  %2838 = vmatpush.msrb.mxu0 %v2749_v58 }
 0x149   :  { %v6006_v18 = vadd.f32 %v887_v1, %v713_v35  ;;  %v1073_v47 = vadd.f32 %v950_v10, %v890_v62  ;;  %v6008_v8 = vpop.f32.mrf.mxu1  ;;  %v5123_v3 = vpop.permute.xlu0 %5122  ;;  %v5119_v62 = vunpack.i.l.bf16 %v5118_v41  ;;  %v5120_v10 = vunpack.i.h.bf16 %v5118_v41 }
 0x14a   :  { %v5124_v48 = vunpack.i.l.bf16 %v5123_v3  ;;  %v5128_v56 = vpop.permute.xlu1 %5127  ;;  %v5133_v58 = vpop.permute.xlu2 %5132  ;;  %v5125_v33 = vunpack.i.h.bf16 %v5123_v3 }
 0x14b   :  { %v6012_v32 = vpop.f32.mrf.mxu0  ;;  %v5135_v60 = vunpack.i.h.bf16 %v5133_v58 }
 0x14c   :  { %4683 = vmatmul.msk.f32.vlgmr.msrb.gmra.mxu1 %vm61_vm1, %v4679_v20  ;;  %v3113_v4 = vsel %vm3111_vm2, %v5115_v6, %v5124_v48  ;;  %v1078_v61 = vadd.f32 %v6012_v32, %v895_v11  ;;  %v3114_v2 = vsel %vm3111_vm2, %v5124_v48, %v5119_v62  ;;  %v3115_v32 = vsel %vm3111_vm2, %v5119_v62, %v5120_v10 }
 0x14d   :  { %4684 = vmatmul.msk.f32.vlgmr.msrb.gmra.mxu2 %vm61_vm1, %v4679_v20  ;;  %4685 = vmatmul.msk.f32.vlgmr.msrb.gmra.mxu3 %vm61_vm1, %v4679_v20 }
 0x14e   :  { %4686 = vmatmul.msk.f32.vlgmr.msra.gmra.mxu0 %vm61_vm1, %v4679_v20  ;;  %2858 = vmatpush.msrb.mxu1 %v2750_v12  ;;  %v3116_v12 = vsel %vm3111_vm2, %v5120_v10, %v5125_v33 }
 0x14f   :  { %2878 = vmatpush.msrb.mxu2 %v2751_v5  ;;  %2898 = vmatpush.msrb.mxu3 %v2752_v22  ;;  %v1075_v5 = vadd.f32 %v6008_v8, %v5980_v51 }
 0x150   :  { %v1010_v28 = vpop.f32.mrf.mxu2  ;;  %v1030_v45 = vpop.f32.mrf.mxu3  ;;  %2961 = vmatpush.msra.mxu0 %v2929_v23  ;;  %v5130_v23 = vunpack.i.h.bf16 %v5128_v56 }
 0x151   :  { %v6030_v54 = vadd.f32 %v1010_v28, %v893_v52  ;;  %v1077_v35 = vadd.f32 %v1030_v45, %v894_v24  ;;  %v6032_v37 = vpop.f32.mrf.mxu1  ;;  %v5138_v19 = vpop.permute.xlu0 %5137  ;;  %v5129_v24 = vunpack.i.l.bf16 %v5128_v56 }
 0x152   :  { %v5143_v34 = vpop.permute.xlu1 %5142  ;;  %v5139_v27 = vunpack.i.l.bf16 %v5138_v19 }
 0x153   :  { %v6038_v29 = vpop.f32.mrf.mxu0  ;;  %v5145_v30 = vunpack.i.h.bf16 %v5143_v34  ;;  %v3295_v26 = vsel %vm3294_vm3, %v5129_v24, %v5130_v23 }
 0x154   :  { %4688 = vmatmul.msk.f32.vlgmr.msra.gmra.mxu1 %vm61_vm1, %v4687_v55  ;;  %v1258_v59 = vadd.f32 %v6038_v29, %v1075_v5  ;;  %v3296_v29 = vsel %vm3294_vm3, %v5130_v23, %v5139_v27 }
 0x155   :  { %4689 = vmatmul.msk.f32.vlgmr.msra.gmra.mxu2 %vm61_vm1, %v4687_v55  ;;  %4690 = vmatmul.msk.f32.vlgmr.msra.gmra.mxu3 %vm61_vm1, %v4687_v55  ;;  %v3297_v41 = vsel %vm3294_vm3, %v5139_v27, %v5145_v30 }
 0x156   :  { %4691 = vmatmul.msk.f32.vlgmr.msrb.gmra.mxu0 %vm61_vm1, %v4687_v55  ;;  %2981 = vmatpush.msra.mxu1 %v2930_v13 }
 0x157   :  { %3001 = vmatpush.msra.mxu2 %v2931_v38  ;;  %3021 = vmatpush.msra.mxu3 %v2932_v40  ;;  %v1079_v40 = vadd.f32 %v6032_v37, %v6006_v18 }
 0x158   :  { %v1133_v25 = vpop.f32.mrf.mxu2  ;;  %v1153_v44 = vpop.f32.mrf.mxu3  ;;  %3041 = vmatpush.msrb.mxu0 %v2933_v15  ;;  %v5140_v15 = vunpack.i.h.bf16 %v5138_v19 }
 0x159   :  { %v6052_v9 = vadd.f32 %v1133_v25, %v1073_v47  ;;  %v1257_v49 = vadd.f32 %v1153_v44, %v1074_v42  ;;  %v6054_v52 = vpop.f32.mrf.mxu1  ;;  %v5134_v47 = vunpack.i.l.bf16 %v5133_v58  ;;  %v5153_v38 = vpop.permute.xlu0 %5152  ;;  %v5144_v25 = vunpack.i.l.bf16 %v5143_v34 }
 0x15a   :  { %v5158_v3 = vpop.permute.xlu1 %5157  ;;  %v5154_v11 = vunpack.i.l.bf16 %v5153_v38  ;;  %v5155_v62 = vunpack.i.h.bf16 %v5153_v38 }
 0x15b   :  { %v6058_v20 = vpop.f32.mrf.mxu0  ;;  %v3117_v22 = vsel %vm3111_vm2, %v5125_v33, %v5134_v47  ;;  %v3118_v13 = vsel %vm3111_vm2, %v5134_v47, %v5135_v60  ;;  %v3299_v48 = vsel %vm3294_vm3, %v5140_v15, %v5144_v25  ;;  %v4711_v33 = vld [vmem:[%s6352_s0 + $0x90] sm:$0xff] }
 0x15c   :  { %4692 = vmatmul.msk.f32.vlgmr.msrb.gmra.mxu1 %vm61_vm1, %v4687_v55  ;;  %v1262_v50 = vadd.f32 %v6058_v20, %v1079_v40 }
 0x15d   :  { %4693 = vmatmul.msk.f32.vlgmr.msrb.gmra.mxu2 %vm61_vm1, %v4687_v55  ;;  %4694 = vmatmul.msk.f32.vlgmr.msrb.gmra.mxu3 %vm61_vm1, %v4687_v55  ;;  %v5148_v55 = vpop.permute.xlu2 %5147 }
 0x15e   :  { %4696 = vmatmul.msk.f32.vlgmr.msra.gmra.mxu0 %vm61_vm1, %v6063_v31  ;;  %3061 = vmatpush.msrb.mxu1 %v2934_v14  ;;  %v5149_v18 = vunpack.i.l.bf16 %v5148_v55  ;;  %v5150_v6 = vunpack.i.h.bf16 %v5148_v55  ;;  %v1259_v14 = vadd.f32 %v6054_v52, %v6030_v54  ;;  %v5160_v54 = vunpack.i.h.bf16 %v5158_v3 }
 0x15f   :  { %3081 = vmatpush.msrb.mxu2 %v2935_v17  ;;  %3144 = vmatpush.msrb.mxu3 %v3112_v39 }
 0x160   :  { %v1213_v63 = vpop.f32.mrf.mxu2  ;;  %v1233_v1 = vpop.f32.mrf.mxu3  ;;  %3164 = vmatpush.msra.mxu0 %v3113_v4  ;;  %v3300_v20 = vsel %vm3294_vm3, %v5144_v25, %v5149_v18  ;;  %v3301_v17 = vsel %vm3294_vm3, %v5149_v18, %v5150_v6  ;;  %v5159_v4 = vunpack.i.l.bf16 %v5158_v3 }
 0x161   :  { %v6077_v53 = vadd.f32 %v1213_v63, %v1077_v35  ;;  %v1261_v7 = vadd.f32 %v1233_v1, %v1078_v61  ;;  %v6079_v16 = vpop.f32.mrf.mxu1  ;;  %v4703_v35 = vld [vmem:[%s6352_s0 + $0x88] sm:$0xff]  ;;  %v5168_v39 = vpop.permute.xlu0 %5167 }
 0x162   :  { %v5169_v10 = vunpack.i.l.bf16 %v5168_v39  ;;  %v3478_v19 = vsel %vm3477_vm4, %v5159_v4, %v5154_v11  ;;  %v5170_v24 = vunpack.i.h.bf16 %v5168_v39 }
 0x163   :  { %v6081_v21 = vpop.f32.mrf.mxu0 }
 0x164   :  { %4697 = vmatmul.msk.f32.vlgmr.msra.gmra.mxu1 %vm61_vm1, %v6063_v31  ;;  %v1442_v56 = vadd.f32 %v6081_v21, %v1259_v14  ;;  %v3479_v21 = vsel %vm3477_vm4, %v5154_v11, %v5155_v62 }
 0x165   :  { %4698 = vmatmul.msk.f32.vlgmr.msra.gmra.mxu2 %vm61_vm1, %v6063_v31  ;;  %4699 = vmatmul.msk.f32.vlgmr.msra.gmra.mxu3 %vm61_vm1, %v6063_v31 }
 0x166   :  { %4700 = vmatmul.msk.f32.vlgmr.msrb.gmra.mxu0 %vm61_vm1, %v6063_v31  ;;  %3184 = vmatpush.msra.mxu1 %v3114_v2  ;;  %v3480_v2 = vsel %vm3477_vm4, %v5155_v62, %v5160_v54 }
 0x167   :  { %3204 = vmatpush.msra.mxu2 %v3115_v32  ;;  %3224 = vmatpush.msra.mxu3 %v3116_v12  ;;  %v1439_v32 = vadd.f32 %v6079_v16, %v6052_v9  ;;  %v3481_v12 = vsel %vm3477_vm4, %v5160_v54, %v5169_v10 }
 0x168   :  { %v1336_v51 = vpop.f32.mrf.mxu2  ;;  %v1356_v8 = vpop.f32.mrf.mxu3  ;;  %3244 = vmatpush.msrb.mxu0 %v3117_v22 }
 0x169   :  { %v6098_v28 = vadd.f32 %v1336_v51, %v1257_v49  ;;  %v1441_v45 = vadd.f32 %v1356_v8, %v1258_v59  ;;  %v6100_v0 = vpop.f32.mrf.mxu1  ;;  %v3298_v49 = vsel %vm3294_vm3, %v5145_v30, %v5140_v15 }
 0x16b   :  { %v6105_v43 = vpop.f32.mrf.mxu0 }
 0x16c   :  { %4701 = vmatmul.msk.f32.vlgmr.msrb.gmra.mxu1 %vm61_vm1, %v6063_v31  ;;  %v1622_v22 = vadd.f32 %v6105_v43, %v1439_v32 }
 0x16d   :  { %4702 = vmatmul.msk.f32.vlgmr.msrb.gmra.mxu2 %vm61_vm1, %v6063_v31  ;;  %4704 = vmatmul.msk.f32.vlgmr.msrb.gmra.mxu3 %vm61_vm1, %v4703_v35  ;;  %v5163_v31 = vpop.permute.xlu2 %5162 }
 0x16e   :  { %4705 = vmatmul.msk.f32.vlgmr.msra.gmra.mxu0 %vm61_vm1, %v4703_v35  ;;  %3327 = vmatpush.msrb.mxu2 %v3295_v26  ;;  %v5164_v34 = vunpack.i.l.bf16 %v5163_v31  ;;  %v5165_v51 = vunpack.i.h.bf16 %v5163_v31 }
 0x16f   :  { %3347 = vmatpush.msrb.mxu3 %v3296_v29  ;;  %3264 = vmatpush.msrb.mxu1 %v3118_v13  ;;  %v1443_v29 = vadd.f32 %v6100_v0, %v6077_v53 }
 0x170   :  { %v1416_v42 = vpop.f32.mrf.mxu2  ;;  %v1436_v57 = vpop.f32.mrf.mxu3  ;;  %3367 = vmatpush.msra.mxu0 %v3297_v41  ;;  %v3483_v55 = vsel %vm3477_vm4, %v5164_v34, %v5165_v51  ;;  %v3484_v43 = vsel %vm3477_vm4, %v5165_v51, %v5170_v24 }
 0x171   :  { %v6120_v37 = vadd.f32 %v1416_v42, %v1261_v7  ;;  %v1445_v44 = vadd.f32 %v1436_v57, %v1262_v50  ;;  %v6122_v46 = vpop.f32.mrf.mxu1  ;;  %v5173_v7 = vpop.permute.xlu1 %5172  ;;  %v4719_v57 = vld [vmem:[%s6352_s0 + $0x98] sm:$0xff] }
 0x172   :  { %v5174_v40 = vunpack.i.l.bf16 %v5173_v7  ;;  %v5175_v15 = vunpack.i.h.bf16 %v5173_v7 }
 0x173   :  { %v6124_v36 = vpop.f32.mrf.mxu0 }
 0x174   :  { %4706 = vmatmul.msk.f32.vlgmr.msra.gmra.mxu1 %vm61_vm1, %v4703_v35  ;;  %v1626_v38 = vadd.f32 %v6124_v36, %v1443_v29  ;;  %v3663_v36 = vsel %vm3660_vm5, %v5174_v40, %v5175_v15 }
 0x175   :  { %4707 = vmatmul.msk.f32.vlgmr.msra.gmra.mxu2 %vm61_vm1, %v4703_v35  ;;  %4708 = vmatmul.msk.f32.vlgmr.msra.gmra.mxu3 %vm61_vm1, %v4703_v35  ;;  %v5178_v5 = vpop.permute.xlu2 %5177 }
 0x176   :  { %4709 = vmatmul.msk.f32.vlgmr.msrb.gmra.mxu0 %vm61_vm1, %v4703_v35  ;;  %3387 = vmatpush.msra.mxu1 %v3298_v49  ;;  %v5180_v60 = vunpack.i.h.bf16 %v5178_v5  ;;  %v5179_v27 = vunpack.i.l.bf16 %v5178_v5 }
 0x177   :  { %3407 = vmatpush.msra.mxu2 %v3299_v48  ;;  %3427 = vmatpush.msra.mxu3 %v3300_v20  ;;  %v1623_v20 = vadd.f32 %v6122_v46, %v6098_v28 }
 0x178   :  { %v1539_v58 = vpop.f32.mrf.mxu2  ;;  %v1559_v61 = vpop.f32.mrf.mxu3  ;;  %3447 = vmatpush.msrb.mxu0 %v3301_v17  ;;  %v3661_v13 = vsel %vm3660_vm5, %v5179_v27, %v5180_v60  ;;  %v3662_v6 = vsel %vm3660_vm5, %v5180_v60, %v5174_v40 }
 0x179   :  { %v6137_v52 = vadd.f32 %v1539_v58, %v1441_v45  ;;  %v1625_v63 = vadd.f32 %v1559_v61, %v1442_v56  ;;  %v6139_v1 = vpop.f32.mrf.mxu1  ;;  %v6161_v45 = vpop.permute.xlu0 %5182 }
 0x17a   :  { %v5188_v26 = vpop.permute.xlu1 %5187  ;;  %v5184_v3 = vunpack.i.l.bf16 %v6161_v45  ;;  %v5185_v39 = vunpack.i.h.bf16 %v6161_v45 }
 0x17b   :  { %v6144_v47 = vpop.f32.mrf.mxu0  ;;  %v5190_v25 = vunpack.i.h.bf16 %v5188_v26  ;;  %v5189_v4 = vunpack.i.l.bf16 %v5188_v26 }
 0x17c   :  { %4710 = vmatmul.msk.f32.vlgmr.msrb.gmra.mxu1 %vm61_vm1, %v4703_v35  ;;  %v3482_v35 = vsel %vm3477_vm4, %v5169_v10, %v5164_v34  ;;  %v3664_v49 = vsel %vm3660_vm5, %v5175_v15, %v5184_v3  ;;  %v1806_v17 = vadd.f32 %v6144_v47, %v1623_v20  ;;  %v6201_v10 = vld [vmem:[%s6352_s0 + $0xa0] sm:$0xff] }
 0x17d   :  { %4712 = vmatmul.msk.f32.vlgmr.msrb.gmra.mxu2 %vm61_vm1, %v4711_v33  ;;  %4713 = vmatmul.msk.f32.vlgmr.msrb.gmra.mxu3 %vm61_vm1, %v4711_v33  ;;  %v5193_v18 = vpop.permute.xlu2 %5192  ;;  %v3665_v31 = vsel %vm3660_vm5, %v5184_v3, %v5190_v25  ;;  %v3667_v7 = vsel %vm3660_vm5, %v5185_v39, %v5189_v4 }
 0x17e   :  { %4714 = vmatmul.msk.f32.vlgmr.msra.gmra.mxu0 %vm61_vm1, %v4711_v33  ;;  %3510 = vmatpush.msrb.mxu1 %v3478_v19  ;;  %v5195_v28 = vunpack.i.h.bf16 %v5193_v18  ;;  %v5194_v46 = vunpack.i.l.bf16 %v5193_v18  ;;  %v4735_v18 = vld [vmem:[%s6352_s0 + $0xa8] sm:$0xff] }
 0x17f   :  { %3530 = vmatpush.msrb.mxu2 %v3479_v21  ;;  %3550 = vmatpush.msrb.mxu3 %v3480_v2  ;;  %v1627_v21 = vadd.f32 %v6139_v1, %v6120_v37 }
 0x180   :  { %v1619_v59 = vpop.f32.mrf.mxu2  ;;  %v1682_v23 = vpop.f32.mrf.mxu3  ;;  %3570 = vmatpush.msra.mxu0 %v3481_v12  ;;  %v3844_v47 = vsel %vm3843_vm6, %v5194_v46, %v5195_v28 }
 0x181   :  { %v6157_v9 = vadd.f32 %v1619_v59, %v1445_v44  ;;  %v1805_v16 = vadd.f32 %v1682_v23, %v1622_v22  ;;  %v6159_v8 = vpop.f32.mrf.mxu1  ;;  %v5198_v48 = vpop.permute.xlu0 %5197 }
 0x182   :  { %v5203_v14 = vpop.permute.xlu1 %5202  ;;  %v5199_v5 = vunpack.i.l.bf16 %v5198_v48  ;;  %v5200_v59 = vunpack.i.h.bf16 %v5198_v48 }
 0x183   :  { %v6163_v30 = vpop.f32.mrf.mxu0  ;;  %v5204_v54 = vunpack.i.l.bf16 %v5203_v14  ;;  %v5205_v37 = vunpack.i.h.bf16 %v5203_v14 }
 0x184   :  { %4715 = vmatmul.msk.f32.vlgmr.msra.gmra.mxu1 %vm61_vm1, %v4711_v33  ;;  %v1810_v12 = vadd.f32 %v6163_v30, %v1627_v21  ;;  %v3847_v30 = vsel %vm3843_vm6, %v5199_v5, %v5200_v59 }
 0x185   :  { %4716 = vmatmul.msk.f32.vlgmr.msra.gmra.mxu2 %vm61_vm1, %v4711_v33  ;;  %4717 = vmatmul.msk.f32.vlgmr.msra.gmra.mxu3 %vm61_vm1, %v4711_v33  ;;  %v5208_v19 = vpop.permute.xlu2 %5207  ;;  %v3845_v2 = vsel %vm3843_vm6, %v5195_v28, %v5204_v54  ;;  %v3846_v45 = vsel %vm3843_vm6, %v5204_v54, %v5199_v5 }
 0x186   :  { %4718 = vmatmul.msk.f32.vlgmr.msrb.gmra.mxu0 %vm61_vm1, %v4711_v33  ;;  %3590 = vmatpush.msra.mxu1 %v3482_v35  ;;  %v3666_v33 = vsel %vm3660_vm5, %v5190_v25, %v5185_v39  ;;  %v5209_v40 = vunpack.i.l.bf16 %v5208_v19 }
 0x187   :  { %3610 = vmatpush.msra.mxu2 %v3483_v55  ;;  %3630 = vmatpush.msra.mxu3 %v3484_v43  ;;  %v3848_v55 = vsel %vm3843_vm6, %v5200_v59, %v5205_v37  ;;  %v1807_v43 = vadd.f32 %v6159_v8, %v6137_v52 }
 0x188   :  { %v1742_v41 = vpop.f32.mrf.mxu2  ;;  %v1762_v50 = vpop.f32.mrf.mxu3  ;;  %3693 = vmatpush.msrb.mxu0 %v3661_v13 }
 0x189   :  { %v1808_v53 = vadd.f32 %v1742_v41, %v1625_v63  ;;  %v1809_v0 = vadd.f32 %v1762_v50, %v1626_v38  ;;  %v6177_v42 = vpop.f32.mrf.mxu1  ;;  %v5213_v32 = vpop.permute.xlu0 %5212  ;;  %v5210_v38 = vunpack.i.h.bf16 %v5208_v19 }
 0x18a   :  { %v5214_v51 = vunpack.i.l.bf16 %v5213_v32  ;;  %v6215_v60 = vpop.permute.xlu1 %5217  ;;  %v5215_v41 = vunpack.i.h.bf16 %v5213_v32  ;;  %v1811_v14 = vadd.f32 %v6177_v42, %v6157_v9 }
 0x18b   :  { %v6182_v44 = vpop.f32.mrf.mxu0  ;;  %v5219_v50 = vunpack.i.l.bf16 %v6215_v60 }
 0x18c   :  { %4720 = vmatmul.msk.f32.vlgmr.msrb.gmra.mxu1 %vm61_vm1, %v4719_v57  ;;  %v3849_v26 = vsel %vm3843_vm6, %v5205_v37, %v5214_v51  ;;  %v1990_v13 = vadd.f32 %v6182_v44, %v1807_v43  ;;  %v3850_v20 = vsel %vm3843_vm6, %v5214_v51, %v5215_v41 }
 0x18d   :  { %4721 = vmatmul.msk.f32.vlgmr.msrb.gmra.mxu2 %vm61_vm1, %v4719_v57  ;;  %4722 = vmatmul.msk.f32.vlgmr.msrb.gmra.mxu3 %vm61_vm1, %v4719_v57  ;;  %v5223_v29 = vpop.permute.xlu2 %5222  ;;  %v4028_v48 = vsel %vm4026_vm7, %v5210_v38, %v5219_v50 }
 0x18e   :  { %4723 = vmatmul.msk.f32.vlgmr.msra.gmra.mxu0 %vm61_vm1, %v4719_v57  ;;  %3713 = vmatpush.msrb.mxu1 %v3662_v6  ;;  %v5224_v28 = vunpack.i.l.bf16 %v5223_v29 }
 0x18f   :  { %3733 = vmatpush.msrb.mxu2 %v3663_v36  ;;  %3753 = vmatpush.msrb.mxu3 %v3664_v49  ;;  %v4027_v36 = vsel %vm4026_vm7, %v5209_v40, %v5210_v38 }
 0x190   :  { %v1865_v56 = vpop.f32.mrf.mxu2  ;;  %v1885_v11 = vpop.f32.mrf.mxu3  ;;  %3773 = vmatpush.msra.mxu0 %v3665_v31 }
 0x191   :  { %v1988_v58 = vadd.f32 %v1865_v56, %v1805_v16  ;;  %v1989_v61 = vadd.f32 %v1885_v11, %v1806_v17  ;;  %v1925_v62 = vpop.f32.mrf.mxu1  ;;  %v5228_v44 = vpop.permute.xlu0 %5227  ;;  %v5220_v56 = vunpack.i.h.bf16 %v6215_v60 }
 0x192   :  { %v1991_v16 = vadd.f32 %v1925_v62, %v1808_v53  ;;  %v5233_v31 = vpop.permute.xlu1 %5232  ;;  %v5229_v9 = vunpack.i.l.bf16 %v5228_v44 }
 0x193   :  { %v6196_v63 = vpop.f32.mrf.mxu0  ;;  %v5234_v32 = vunpack.i.l.bf16 %v5233_v31 }
 0x194   :  { %4724 = vmatmul.msk.f32.vlgmr.msra.gmra.mxu1 %vm61_vm1, %v4719_v57  ;;  %v1994_v39 = vadd.f32 %v6196_v63, %v1811_v14  ;;  %v4031_v63 = vsel %vm4026_vm7, %v5220_v56, %v5224_v28 }
 0x195   :  { %4725 = vmatmul.msk.f32.vlgmr.msra.gmra.mxu2 %vm61_vm1, %v4719_v57  ;;  %4726 = vmatmul.msk.f32.vlgmr.msra.gmra.mxu3 %vm61_vm1, %v4719_v57 }
 0x196   :  { %4728 = vmatmul.msk.f32.vlgmr.msrb.gmra.mxu0 %vm61_vm1, %v6201_v10  ;;  %3793 = vmatpush.msra.mxu1 %v3666_v33 }
 0x197   :  { %3813 = vmatpush.msra.mxu2 %v3667_v7  ;;  %3876 = vmatpush.msra.mxu3 %v3844_v47  ;;  %v4032_v7 = vsel %vm4026_vm7, %v5224_v28, %v5229_v9  ;;  %v5238_v47 = vpop.permute.xlu2 %5237 }
 0x198   :  { %v1945_v22 = vpop.f32.mrf.mxu2  ;;  %v1965_v34 = vpop.f32.mrf.mxu3  ;;  %3896 = vmatpush.msrb.mxu0 %v3845_v2  ;;  %v5240_v59 = vunpack.i.h.bf16 %v5238_v47 }
 0x199   :  { %v1992_v1 = vadd.f32 %v1945_v22, %v1809_v0  ;;  %v1993_v23 = vadd.f32 %v1965_v34, %v1810_v12  ;;  %v2048_v24 = vpop.f32.mrf.mxu1  ;;  %v5225_v0 = vunpack.i.h.bf16 %v5223_v29  ;;  %v5243_v19 = vpop.permute.xlu0 %5242  ;;  %v5239_v12 = vunpack.i.l.bf16 %v5238_v47 }
 0x19a   :  { %v2171_v57 = vadd.f32 %v2048_v24, %v1988_v58  ;;  %v5248_v2 = vpop.permute.xlu1 %5247  ;;  %v5235_v34 = vunpack.i.h.bf16 %v5233_v31  ;;  %v5245_v40 = vunpack.i.h.bf16 %v5243_v19 }
 0x19b   :  { %v2108_v27 = vpop.f32.mrf.mxu0  ;;  %v4029_v17 = vsel %vm4026_vm7, %v5219_v50, %v5225_v0  ;;  %v5249_v24 = vunpack.i.l.bf16 %v5248_v2  ;;  %v5250_v38 = vunpack.i.h.bf16 %v5248_v2 }
 0x19c   :  { %v6218_v35 = vadd.f32 %v2108_v27, %v1991_v16  ;;  %4729 = vmatmul.msk.f32.vlgmr.msrb.gmra.mxu1 %vm61_vm1, %v6201_v10  ;;  %v4743_v16 = vld [vmem:[%s6352_s0 + $0xb0] sm:$0xff]  ;;  %v4210_v27 = vsel %vm4209_vm8, %v5239_v12, %v5234_v32 }
 0x19d   :  { %4730 = vmatmul.msk.f32.vlgmr.msrb.gmra.mxu2 %vm61_vm1, %v6201_v10  ;;  %4731 = vmatmul.msk.f32.vlgmr.msrb.gmra.mxu3 %vm61_vm1, %v6201_v10 }
 0x19e   :  { %4732 = vmatmul.msk.f32.vlgmr.msra.gmra.mxu0 %vm61_vm1, %v6201_v10  ;;  %3916 = vmatpush.msrb.mxu1 %v3846_v45 }
 0x19f   :  { %3936 = vmatpush.msrb.mxu2 %v3847_v30  ;;  %3956 = vmatpush.msrb.mxu3 %v3848_v55  ;;  %v4211_v30 = vsel %vm4209_vm8, %v5234_v32, %v5235_v34  ;;  %v4212_v55 = vsel %vm4209_vm8, %v5235_v34, %v5240_v59  ;;  %v4759_v32 = vld [vmem:[%s6352_s0 + $0xc0] sm:$0xff] }
 0x1a0   :  { %v2068_v52 = vpop.f32.mrf.mxu2  ;;  %v2088_v8 = vpop.f32.mrf.mxu3  ;;  %3976 = vmatpush.msra.mxu0 %v3849_v26  ;;  %v5244_v26 = vunpack.i.l.bf16 %v5243_v19 }
 0x1a1   :  { %v2172_v15 = vadd.f32 %v2068_v52, %v1989_v61  ;;  %v2173_v3 = vadd.f32 %v2088_v8, %v1990_v13  ;;  %v2128_v53 = vpop.f32.mrf.mxu1  ;;  %v5230_v61 = vunpack.i.h.bf16 %v5228_v44  ;;  %v5258_v43 = vpop.permute.xlu0 %5257 }
 0x1a2   :  { %v2175_v25 = vadd.f32 %v2128_v53, %v1992_v1  ;;  %v5260_v50 = vunpack.i.h.bf16 %v5258_v43  ;;  %v5253_v44 = vpop.permute.xlu2 %5252 }
 0x1a3   :  { %v2231_v6 = vpop.f32.mrf.mxu0  ;;  %v4033_v21 = vsel %vm4026_vm7, %v5229_v9, %v5230_v61  ;;  %v5255_v14 = vunpack.i.h.bf16 %v5253_v44 }
 0x1a4   :  { %v6239_v49 = vadd.f32 %v2231_v6, %v2171_v57  ;;  %4733 = vmatmul.msk.f32.vlgmr.msra.gmra.mxu1 %vm61_vm1, %v6201_v10  ;;  %v5263_v6 = vpop.permute.xlu1 %5262 }
 0x1a5   :  { %4734 = vmatmul.msk.f32.vlgmr.msra.gmra.mxu2 %vm61_vm1, %v6201_v10  ;;  %4736 = vmatmul.msk.f32.vlgmr.msra.gmra.mxu3 %vm61_vm1, %v4735_v18  ;;  %v4030_v10 = vsel %vm4026_vm7, %v5225_v0, %v5220_v56  ;;  %v4214_v0 = vsel %vm4209_vm8, %v5249_v24, %v5244_v26  ;;  %v5264_v31 = vunpack.i.l.bf16 %v5263_v6 }
 0x1a6   :  { %4737 = vmatmul.msk.f32.vlgmr.msrb.gmra.mxu0 %vm61_vm1, %v4735_v18  ;;  %4059 = vmatpush.msra.mxu2 %v4027_v36 }
 0x1a7   :  { %4079 = vmatpush.msra.mxu3 %v4028_v48  ;;  %3996 = vmatpush.msra.mxu1 %v3850_v20  ;;  %v4396_v61 = vsel %vm4392_vm9, %v5255_v14, %v5264_v31 }
 0x1a8   :  { %v2148_v11 = vpop.f32.mrf.mxu2  ;;  %v2168_v4 = vpop.f32.mrf.mxu3  ;;  %4099 = vmatpush.msrb.mxu0 %v4029_v17 }
 0x1a9   :  { %v2176_v42 = vadd.f32 %v2148_v11, %v1993_v23  ;;  %v2177_v46 = vadd.f32 %v2168_v4, %v1994_v39  ;;  %v2251_v58 = vpop.f32.mrf.mxu1  ;;  %v4751_v11 = vld [vmem:[%s6352_s0 + $0xb8] sm:$0xff]  ;;  %v4387_v28 = vpop.permute.xlu0 %4386 }
 0x1aa   :  { %v2355_v62 = vadd.f32 %v2251_v58, %v2172_v15  ;;  %v5259_v15 = vunpack.i.l.bf16 %v5258_v43  ;;  %v4391_v19 = vpop.permute.xlu2 %4390 }
 0x1ab   :  { %v2311_v54 = vpop.f32.mrf.mxu0 }
 0x1ac   :  { %v6255_v33 = vadd.f32 %v2311_v54, %v2175_v25  ;;  %4738 = vmatmul.msk.f32.vlgmr.msrb.gmra.mxu1 %vm61_vm1, %v4735_v18  ;;  %v4215_v25 = vsel %vm4209_vm8, %v5244_v26, %v5245_v40  ;;  %v4393_v36 = vsel %vm4392_vm9, %v5259_v15, %v5260_v50  ;;  %v5265_v54 = vunpack.i.h.bf16 %v5263_v6 }
 0x1ad   :  { %4739 = vmatmul.msk.f32.vlgmr.msrb.gmra.mxu2 %vm61_vm1, %v4735_v18  ;;  %4740 = vmatmul.msk.f32.vlgmr.msrb.gmra.mxu3 %vm61_vm1, %v4735_v18 }
 0x1ae   :  { %4741 = vmatmul.msk.f32.vlgmr.msra.gmra.mxu0 %vm61_vm1, %v4735_v18  ;;  %4119 = vmatpush.msrb.mxu1 %v4030_v10  ;;  %v4398_v12 = vsel %vm4392_vm9, %v4387_v28, %v5265_v54 }
 0x1af   :  { %4139 = vmatpush.msrb.mxu2 %v4031_v63  ;;  %4159 = vmatpush.msrb.mxu3 %v4032_v7 }
 0x1b0   :  { %v2271_v5 = vpop.f32.mrf.mxu2  ;;  %v2291_v22 = vpop.f32.mrf.mxu3  ;;  %4179 = vmatpush.msra.mxu0 %v4033_v21 }
 0x1b1   :  { %v2356_v37 = vadd.f32 %v2271_v5, %v2173_v3  ;;  %v2357_v1 = vadd.f32 %v2291_v22, %v6218_v35  ;;  %v2331_v23 = vpop.f32.mrf.mxu1  ;;  %v4213_v35 = vsel %vm4209_vm8, %v5240_v59, %v5249_v24  ;;  %v4399_v22 = vsel %vm4392_vm9, %v5265_v54, %v4391_v19 }
 0x1b2   :  { %v2359_v51 = vadd.f32 %v2331_v23, %v2176_v42 }
 0x1b3   :  { %v2434_v60 = vpop.f32.mrf.mxu0 }
 0x1b4   :  { %v6269_v45 = vadd.f32 %v2434_v60, %v2355_v62  ;;  %4742 = vmatmul.msk.f32.vlgmr.msra.gmra.mxu1 %vm61_vm1, %v4735_v18  ;;  %v4216_v18 = vsel %vm4209_vm8, %v5245_v40, %v5250_v38  ;;  %v4397_v62 = vsel %vm4392_vm9, %v5264_v31, %v4387_v28 }
 0x1b5   :  { %4744 = vmatmul.msk.f32.vlgmr.msra.gmra.mxu2 %vm61_vm1, %v4743_v16  ;;  %4745 = vmatmul.msk.f32.vlgmr.msra.gmra.mxu3 %vm61_vm1, %v4743_v16 }
 0x1b6   :  { %4746 = vmatmul.msk.f32.vlgmr.msrb.gmra.mxu0 %vm61_vm1, %v4743_v16  ;;  %4242 = vmatpush.msra.mxu1 %v4210_v27 }
 0x1b7   :  { %4262 = vmatpush.msra.mxu2 %v4211_v30  ;;  %4282 = vmatpush.msra.mxu3 %v4212_v55 }
 0x1b8   :  { %v2351_v29 = vpop.f32.mrf.mxu2  ;;  %v2414_v13 = vpop.f32.mrf.mxu3  ;;  %4302 = vmatpush.msrb.mxu0 %v4213_v35 }
 0x1b9   :  { %v2360_v52 = vadd.f32 %v2351_v29, %v2177_v46  ;;  %v2537_v8 = vadd.f32 %v2414_v13, %v6239_v49  ;;  %v2454_v41 = vpop.f32.mrf.mxu1  ;;  %v5254_v49 = vunpack.i.l.bf16 %v5253_v44 }
 0x1ba   :  { %v2539_v3 = vadd.f32 %v2454_v41, %v2356_v37 }
 0x1bb   :  { %v2514_v53 = vpop.f32.mrf.mxu0  ;;  %v4394_v42 = vsel %vm4392_vm9, %v5260_v50, %v5254_v49  ;;  %v4395_v58 = vsel %vm4392_vm9, %v5254_v49, %v5255_v14 }
 0x1bc   :  { %v2542_v57 = vadd.f32 %v2514_v53, %v2359_v51  ;;  %4747 = vmatmul.msk.f32.vlgmr.msrb.gmra.mxu1 %vm61_vm1, %v4743_v16 }
 0x1bd   :  { %4748 = vmatmul.msk.f32.vlgmr.msrb.gmra.mxu2 %vm61_vm1, %v4743_v16  ;;  %4749 = vmatmul.msk.f32.vlgmr.msrb.gmra.mxu3 %vm61_vm1, %v4743_v16 }
 0x1be   :  { %4750 = vmatmul.msk.f32.vlgmr.msra.gmra.mxu0 %vm61_vm1, %v4743_v16  ;;  %4322 = vmatpush.msrb.mxu1 %v4214_v0 }
 0x1bf   :  { %4342 = vmatpush.msrb.mxu2 %v4215_v25  ;;  %4362 = vmatpush.msrb.mxu3 %v4216_v18 }
 0x1c0   :  { %v2474_v48 = vpop.f32.mrf.mxu2  ;;  %v2494_v20 = vpop.f32.mrf.mxu3  ;;  %4425 = vmatpush.msra.mxu0 %v4393_v36 }
 0x1c1   :  { %v2540_v17 = vadd.f32 %v2474_v48, %v2357_v1  ;;  %v2541_v39 = vadd.f32 %v2494_v20, %v6255_v33  ;;  %v2534_v56 = vpop.f32.mrf.mxu1 }
 0x1c2   :  { %v2543_v4 = vadd.f32 %v2534_v56, %v2360_v52 }
 0x1c3   :  { %v2637_v9 = vpop.f32.mrf.mxu0 }
 0x1c4   :  { %v2722_v46 = vadd.f32 %v2637_v9, %v2539_v3  ;;  %4752 = vmatmul.msk.f32.vlgmr.msra.gmra.mxu1 %vm61_vm1, %v4751_v11 }
 0x1c5   :  { %4753 = vmatmul.msk.f32.vlgmr.msra.gmra.mxu2 %vm61_vm1, %v4751_v11  ;;  %4754 = vmatmul.msk.f32.vlgmr.msra.gmra.mxu3 %vm61_vm1, %v4751_v11 }
 0x1c6   :  { %4755 = vmatmul.msk.f32.vlgmr.msrb.gmra.mxu0 %vm61_vm1, %v4751_v11  ;;  %4445 = vmatpush.msra.mxu1 %v4394_v42 }
 0x1c7   :  { %4465 = vmatpush.msra.mxu2 %v4395_v58  ;;  %4485 = vmatpush.msra.mxu3 %v4396_v61 }
 0x1c8   :  { %v2597_v10 = vpop.f32.mrf.mxu2  ;;  %v2617_v33 = vpop.f32.mrf.mxu3  ;;  %4505 = vmatpush.msrb.mxu0 %v4397_v62 }
 0x1c9   :  { %v2720_v63 = vadd.f32 %v2597_v10, %v2537_v8  ;;  %v2721_v7 = vadd.f32 %v2617_v33, %v6269_v45  ;;  %v2657_v47 = vpop.f32.mrf.mxu1 }
 0x1ca   :  { %v2723_v21 = vadd.f32 %v2657_v47, %v2540_v17 }
 0x1cb   :  { %v2717_v2 = vpop.f32.mrf.mxu0 }
 0x1cc   :  { %v2726_v5 = vadd.f32 %v2717_v2, %v2543_v4  ;;  %4756 = vmatmul.msk.f32.vlgmr.msrb.gmra.mxu1 %vm61_vm1, %v4751_v11 }
 0x1cd   :  { %4757 = vmatmul.msk.f32.vlgmr.msrb.gmra.mxu2 %vm61_vm1, %v4751_v11  ;;  %4758 = vmatmul.msk.f32.vlgmr.msrb.gmra.mxu3 %vm61_vm1, %v4751_v11 }
 0x1ce   :  { %4760 = vmatmul.msk.f32.vlgmr.msra.gmra.mxu0 %vm61_vm1, %v4759_v32  ;;  %4525 = vmatpush.msrb.mxu1 %v4398_v12 }
 0x1cf   :  { %4545 = vmatpush.msrb.mxu2 %v4399_v22 }
 0x1d0   :  { %v2677_v34 = vpop.f32.mrf.mxu2  ;;  %v2697_v59 = vpop.f32.mrf.mxu3 }
 0x1d1   :  { %v2724_v37 = vadd.f32 %v2677_v34, %v2541_v39  ;;  %v2725_v1 = vadd.f32 %v2697_v59, %v2542_v57  ;;  %v2780_v23 = vpop.f32.mrf.mxu1 }
 0x1d2   :  { %v2903_v24 = vadd.f32 %v2780_v23, %v2720_v63 }
 0x1d3   :  { %v2840_v51 = vpop.f32.mrf.mxu0 }
 0x1d4   :  { %v2906_v16 = vadd.f32 %v2840_v51, %v2723_v21  ;;  %4761 = vmatmul.msk.f32.vlgmr.msra.gmra.mxu1 %vm61_vm1, %v4759_v32 }
 0x1d5   :  { %4762 = vmatmul.msk.f32.vlgmr.msra.gmra.mxu2 %vm61_vm1, %v4759_v32  ;;  %4763 = vmatmul.msk.f32.vlgmr.msra.gmra.mxu3 %vm61_vm1, %v4759_v32 }
 0x1d6   :  { %4764 = vmatmul.msk.f32.vlgmr.msrb.gmra.mxu0 %vm61_vm1, %v4759_v32 }
 0x1d8   :  { %v2800_v60 = vpop.f32.mrf.mxu2  ;;  %v2820_v27 = vpop.f32.mrf.mxu3 }
 0x1d9   :  { %v2904_v45 = vadd.f32 %v2800_v60, %v2721_v7  ;;  %v2905_v30 = vadd.f32 %v2820_v27, %v2722_v46  ;;  %v2860_v55 = vpop.f32.mrf.mxu1 }
 0x1da   :  { %v2907_v35 = vadd.f32 %v2860_v55, %v2724_v37 }
 0x1db   :  { %v2963_v43 = vpop.f32.mrf.mxu0 }
 0x1dc   :  { %v3086_v26 = vadd.f32 %v2963_v43, %v2903_v24  ;;  %4765 = vmatmul.msk.f32.vlgmr.msrb.gmra.mxu1 %vm61_vm1, %v4759_v32 }
 0x1dd   :  { %4766 = vmatmul.msk.f32.vlgmr.msrb.gmra.mxu2 %vm61_vm1, %v4759_v32 }
 0x1e0   :  { %v2880_v29 = vpop.f32.mrf.mxu2  ;;  %v2900_v13 = vpop.f32.mrf.mxu3 }
 0x1e1   :  { %v2908_v38 = vadd.f32 %v2880_v29, %v2725_v1  ;;  %v2909_v40 = vadd.f32 %v2900_v13, %v2726_v5  ;;  %v2983_v52 = vpop.f32.mrf.mxu1 }
 0x1e2   :  { %v3087_v8 = vadd.f32 %v2983_v52, %v2904_v45 }
 0x1e3   :  { %v3043_v41 = vpop.f32.mrf.mxu0 }
 0x1e4   :  { %v3090_v50 = vadd.f32 %v3043_v41, %v2907_v35 }
 0x1e8   :  { %v3003_v15 = vpop.f32.mrf.mxu2  ;;  %v3023_v3 = vpop.f32.mrf.mxu3 }
 0x1e9   :  { %v3088_v53 = vadd.f32 %v3003_v15, %v2905_v30  ;;  %v3089_v0 = vadd.f32 %v3023_v3, %v2906_v16  ;;  %v3063_v57 = vpop.f32.mrf.mxu1 }
 0x1ea   :  { %v3091_v25 = vadd.f32 %v3063_v57, %v2908_v38 }
 0x1eb   :  { %v3166_v18 = vpop.f32.mrf.mxu0 }
 0x1ec   :  { %v3270_v44 = vadd.f32 %v3166_v18, %v3087_v8 }
 0x1f0   :  { %v3083_v6 = vpop.f32.mrf.mxu2  ;;  %v3146_v36 = vpop.f32.mrf.mxu3 }
 0x1f1   :  { %v3092_v49 = vadd.f32 %v3083_v6, %v2909_v40  ;;  %v3269_v48 = vadd.f32 %v3146_v36, %v3086_v26  ;;  %v3186_v20 = vpop.f32.mrf.mxu1 }
 0x1f2   :  { %v3271_v31 = vadd.f32 %v3186_v20, %v3088_v53 }
 0x1f3   :  { %v3246_v14 = vpop.f32.mrf.mxu0 }
 0x1f4   :  { %v3274_v17 = vadd.f32 %v3246_v14, %v3091_v25 }
 0x1f8   :  { %v3206_v39 = vpop.f32.mrf.mxu2  ;;  %v3226_v56 = vpop.f32.mrf.mxu3 }
 0x1f9   :  { %v3272_v11 = vadd.f32 %v3206_v39, %v3089_v0  ;;  %v3273_v4 = vadd.f32 %v3226_v56, %v3090_v50  ;;  %v3266_v28 = vpop.f32.mrf.mxu1 }
 0x1fa   :  { %v3275_v9 = vadd.f32 %v3266_v28, %v3092_v49 }
 0x1fb   :  { %v3369_v42 = vpop.f32.mrf.mxu0 }
 0x1fc   :  { %v6315_v46 = vadd.f32 %v3369_v42, %v3271_v31 }
 0x200   :  { %v3329_v58 = vpop.f32.mrf.mxu2  ;;  %v3349_v61 = vpop.f32.mrf.mxu3 }
 0x201   :  { %v3453_v62 = vadd.f32 %v3349_v61, %v3270_v44  ;;  %v3389_v54 = vpop.f32.mrf.mxu1  ;;  %v3452_v8 = vadd.f32 %v3329_v58, %v3269_v48 }
 0x202   :  { %v3455_v10 = vadd.f32 %v3389_v54, %v3272_v11 }
 0x203   :  { %v3449_v33 = vpop.f32.mrf.mxu0 }
 0x204   :  { %v6317_v63 = vadd.f32 %v3449_v33, %v3275_v9 }
 0x208   :  { %v3409_v7 = vpop.f32.mrf.mxu2  ;;  %v3429_v47 = vpop.f32.mrf.mxu3 }
 0x209   :  { %v3457_v19 = vadd.f32 %v3429_v47, %v3274_v17  ;;  %v3512_v21 = vpop.f32.mrf.mxu1  ;;  %v3456_v25 = vadd.f32 %v3409_v7, %v3273_v4 }
 0x20a   :  { %v3635_v3 = vadd.f32 %v3512_v21, %v3452_v8 }
 0x20b   :  { %v3572_v2 = vpop.f32.mrf.mxu0 }
 0x20c   :  { %v3638_v32 = vadd.f32 %v3572_v2, %v3455_v10 }
 0x210   :  { %v3532_v12 = vpop.f32.mrf.mxu2  ;;  %v3552_v5 = vpop.f32.mrf.mxu3 }
 0x211   :  { %v3592_v22 = vpop.f32.mrf.mxu1  ;;  %v3636_v18 = vadd.f32 %v3532_v12, %v3453_v62  ;;  %v3637_v4 = vadd.f32 %v3552_v5, %v6315_v46 }
 0x212   :  { %v3639_v20 = vadd.f32 %v3592_v22, %v3456_v25 }
 0x213   :  { %v3695_v34 = vpop.f32.mrf.mxu0 }
 0x214   :  { %v3818_v0 = vadd.f32 %v3695_v34, %v3635_v3 }
 0x218   :  { %v3612_v59 = vpop.f32.mrf.mxu2  ;;  %v6319_v37 = vpop.f32.mrf.mxu3 }
 0x219   :  { %v3715_v1 = vpop.f32.mrf.mxu1  ;;  %v3640_v9 = vadd.f32 %v3612_v59, %v3457_v19 }
 0x21a   :  { %v3819_v31 = vadd.f32 %v3715_v1, %v3636_v18 }
 0x21b   :  { %v3775_v23 = vpop.f32.mrf.mxu0 }
 0x21c   :  { %v3822_v39 = vadd.f32 %v3775_v23, %v3639_v20 }
 0x220   :  { %v3735_v24 = vpop.f32.mrf.mxu2  ;;  %v3755_v51 = vpop.f32.mrf.mxu3 }
 0x221   :  { %v3795_v16 = vpop.f32.mrf.mxu1  ;;  %v3820_v54 = vadd.f32 %v3735_v24, %v3637_v4  ;;  %v3821_v10 = vadd.f32 %v3755_v51, %v3638_v32  ;;  %v3641_v32 = vadd.f32 %v6319_v37, %v6317_v63 }
 0x222   :  { %v3823_v7 = vadd.f32 %v3795_v16, %v3640_v9 }
 0x223   :  { %v3898_v60 = vpop.f32.mrf.mxu0 }
 0x224   :  { %v4002_v56 = vadd.f32 %v3898_v60, %v3819_v31 }
 0x228   :  { %v6321_v27 = vpop.f32.mrf.mxu2  ;;  %v3878_v45 = vpop.f32.mrf.mxu3 }
 0x229   :  { %v3918_v30 = vpop.f32.mrf.mxu1  ;;  %v4001_v57 = vadd.f32 %v3878_v45, %v3818_v0  ;;  %v3824_v60 = vadd.f32 %v6321_v27, %v3641_v32 }
 0x22a   :  { %v4003_v2 = vadd.f32 %v3918_v30, %v3820_v54 }
 0x22b   :  { %v3978_v55 = vpop.f32.mrf.mxu0 }
 0x22c   :  { %v4006_v34 = vadd.f32 %v3978_v55, %v3823_v7 }
 0x230   :  { %v3938_v35 = vpop.f32.mrf.mxu2  ;;  %v3958_v43 = vpop.f32.mrf.mxu3 }
 0x231   :  { %v6323_v26 = vpop.f32.mrf.mxu1  ;;  %v4005_v11 = vadd.f32 %v3958_v43, %v3822_v39  ;;  %v4004_v12 = vadd.f32 %v3938_v35, %v3821_v10 }
 0x232   :  { %v4007_v43 = vadd.f32 %v6323_v26, %v3824_v60 }
 0x233   :  { %v4101_v29 = vpop.f32.mrf.mxu0 }
 0x234   :  { %v4186_v19 = vadd.f32 %v4101_v29, %v4003_v2 }
 0x238   :  { %v4061_v13 = vpop.f32.mrf.mxu2  ;;  %v4081_v38 = vpop.f32.mrf.mxu3 }
 0x239   :  { %v4121_v40 = vpop.f32.mrf.mxu1  ;;  %v4184_v44 = vadd.f32 %v4061_v13, %v4001_v57  ;;  %v4185_v28 = vadd.f32 %v4081_v38, %v4002_v56 }
 0x23a   :  { %v4187_v5 = vadd.f32 %v4121_v40, %v4004_v12 }
 0x23b   :  { %v4181_v52 = vpop.f32.mrf.mxu0 }
 0x23c   :  { %v4190_v63 = vadd.f32 %v4181_v52, %v4007_v43 }
 0x240   :  { %v4141_v41 = vpop.f32.mrf.mxu2  ;;  %v4161_v50 = vpop.f32.mrf.mxu3 }
 0x241   :  { %v4244_v15 = vpop.f32.mrf.mxu1  ;;  %v4188_v42 = vadd.f32 %v4141_v41, %v4005_v11  ;;  %v4189_v59 = vadd.f32 %v4161_v50, %v4006_v34 }
 0x242   :  { %v4367_v14 = vadd.f32 %v4244_v15, %v4184_v44 }
 0x243   :  { %v4304_v53 = vpop.f32.mrf.mxu0 }
 0x244   :  { %v4370_v1 = vadd.f32 %v4304_v53, %v4187_v5 }
 0x248   :  { %v4264_v6 = vpop.f32.mrf.mxu2  ;;  %v4284_v36 = vpop.f32.mrf.mxu3 }
 0x249   :  { %v4324_v49 = vpop.f32.mrf.mxu1  ;;  %v4368_v58 = vadd.f32 %v4264_v6, %v4185_v28  ;;  %v4369_v23 = vadd.f32 %v4284_v36, %v4186_v19 }
 0x24a   :  { %v4371_v47 = vadd.f32 %v4324_v49, %v4188_v42 }
 0x24b   :  { %v4427_v17 = vpop.f32.mrf.mxu0 }
 0x24c   :  { %v4550_v48 = vadd.f32 %v4427_v17, %v4367_v14 }
 0x24e   :  { %4557 = vst [vmem:[%s6353_s2] sm:$0xff] %v4550_v48 }
 0x250   :  { %v4344_v61 = vpop.f32.mrf.mxu2  ;;  %v4364_v62 = vpop.f32.mrf.mxu3 }
 0x251   :  { %v4447_v33 = vpop.f32.mrf.mxu1  ;;  %v4372_v24 = vadd.f32 %v4344_v61, %v4189_v59  ;;  %v4373_v37 = vadd.f32 %v4364_v62, %v4190_v63 }
 0x252   :  { %v4551_v21 = vadd.f32 %v4447_v33, %v4368_v58 }
 0x253   :  { %v4507_v22 = vpop.f32.mrf.mxu0 }
 0x254   :  { %4558 = vst [vmem:[%s6353_s2 + $0x8] sm:$0xff] %v4551_v21  ;;  %v4554_v46 = vadd.f32 %v4507_v22, %v4371_v47 }
 0x256   :  { %4561 = vst [vmem:[%s6353_s2 + $0x20] sm:$0xff] %v4554_v46 }
 0x258   :  { %v4467_v51 = vpop.f32.mrf.mxu2  ;;  %v4487_v16 = vpop.f32.mrf.mxu3 }
 0x259   :  { %v4552_v45 = vadd.f32 %v4467_v51, %v4369_v23  ;;  %v4553_v30 = vadd.f32 %v4487_v16, %v4370_v1  ;;  %v4527_v55 = vpop.f32.mrf.mxu1 }
 0x25a   :  { %v4555_v35 = vadd.f32 %v4527_v55, %v4372_v24 }
 0x25b   :  { %4559 = vst [vmem:[%s6353_s2 + $0x10] sm:$0xff] %v4552_v45 }
 0x25c   :  { %4560 = vst [vmem:[%s6353_s2 + $0x18] sm:$0xff] %v4553_v30 }
 0x25d   :  { %4562 = vst [vmem:[%s6353_s2 + $0x28] sm:$0xff] %v4555_v35 }
 0x260   :  { %v4547_v27 = vpop.f32.mrf.mxu2 }
 0x261   :  { %v4556_v29 = vadd.f32 %v4547_v27, %v4373_v37 }
 0x263   :  { %4563 = vst [vmem:[%s6353_s2 + $0x30] sm:$0xff] %v4556_v29 }

</bundles_post_ra>
